<compile_context>
chip_gen: v5e
topology: v5e:2x2
jax: 0.10.0
libtpu: 0.0.40
codegen_flags: <defaults>
</compile_context>

<pallas_src>
import functools

import jax
import jax.numpy as jnp
from jax.experimental import pallas as pl
from jax.experimental.pallas import tpu as pltpu


# ----------------------------- configuration --------------------------------

_LANE = 128              # stored channel dims are zero-padded to this lane width
_TM_TARGET = 256         # M tile target (v7x/v5e).  Raise to 512 on v6e.
_TK_CAP = 512            # K tile cap for the K-tiled (production-K) path.
_K_RESIDENT_MAX = 2048   # up to this K: single full-K weight block, no K grid axis.
# Explicit scoped-VMEM limit: v5e default is only 16 MiB; raise to 64-96 MiB on
# v6e for production widths, keep comfortably under 64 MiB total on v7x.
_VMEM_LIMIT_BYTES = 32 * 1024 * 1024


def _round_up(x, m):
    return ((x + m - 1) // m) * m


def _pick_tile(total, cap, quantum):
    """Largest multiple of `quantum` that divides `total` and is <= cap."""
    best = quantum
    t = quantum
    while t <= min(total, cap):
        if total % t == 0:
            best = t
        t += quantum
    return best


# --------------------------- fused matmul kernels ----------------------------

def _epilogue(acc, scale_ref, shift_ref, res_ref, relu):
    """f32 epilogue: folded-BN affine (+ residual) (+ ReLU)."""
    y = acc * scale_ref[...] + shift_ref[...]
    if res_ref is not None:
        y = y + res_ref[...].astype(jnp.float32)
    if relu:
        y = jnp.maximum(y, 0.0)
    return y


def _mm_direct_kernel(x_ref, w_ref, scale_ref, shift_ref, *rest, relu, has_res):
    """Single full-K block per M tile: dot + epilogue straight into the output."""
    if has_res:
        res_ref, o_ref = rest
    else:
        res_ref = None
        (o_ref,) = rest
    acc = jnp.dot(x_ref[...], w_ref[...], preferred_element_type=jnp.float32)
    o_ref[...] = _epilogue(acc, scale_ref, shift_ref, res_ref, relu).astype(o_ref.dtype)


def _mm_ktiled_kernel(x_ref, w_ref, scale_ref, shift_ref, *rest, relu, has_res):
    """Production-K path: accumulate over the K grid axis in an f32 scratch."""
    if has_res:
        res_ref, o_ref, acc_ref = rest
    else:
        res_ref = None
        o_ref, acc_ref = rest
    k = pl.program_id(1)

    @pl.when(k == 0)
    def _init():
        acc_ref[...] = jnp.zeros_like(acc_ref)

    acc_ref[...] += jnp.dot(x_ref[...], w_ref[...],
                            preferred_element_type=jnp.float32)

    @pl.when(k == pl.num_programs(1) - 1)
    def _fin():
        o_ref[...] = _epilogue(acc_ref[...], scale_ref, shift_ref,
                               res_ref, relu).astype(o_ref.dtype)


def fused_matmul(x, w, scale, shift, *, relu, residual=None,
                 out_dtype=jnp.bfloat16, tm_target=_TM_TARGET):
    """out = maybe_relu((x @ w) * scale + shift [+ residual]).

    x: (M, K) bf16 (channel-dense patches), w: (K, N) with N % 128 == 0,
    scale/shift: (N,) f32 folded eval-mode BN, residual: optional (M, N).
    """
    M, K = x.shape
    Kw, N = w.shape
    assert Kw == K and N % _LANE == 0

    # M tiling: multiples of the bf16 sublane quantum (16); aim for >= 2 tiles
    # so the "parallel" M axis feeds both TensorCores on v7x.
    half = _round_up(max(1, (M + 1) // 2), 16)
    tm = max(16, min(tm_target, half))
    Mp = _round_up(M, tm)

    xp = x.astype(jnp.bfloat16)
    wp = w.astype(jnp.bfloat16)
    scale2 = scale.reshape(1, N).astype(jnp.float32)
    shift2 = shift.reshape(1, N).astype(jnp.float32)

    has_res = residual is not None
    rp = None
    if has_res:
        rp = residual.astype(jnp.bfloat16)
    if Mp != M:  # ragged-M fallback only; never hit at these shapes
        xp = jnp.pad(xp, ((0, Mp - M), (0, 0)))
        if has_res:
            rp = jnp.pad(rp, ((0, Mp - M), (0, 0)))

    args = [xp, wp, scale2, shift2]
    if has_res:
        args.append(rp)

    if K <= _K_RESIDENT_MAX:
        # Weight / scale / shift are constant-index blocks -> DMA'd once and
        # kept VMEM-resident across all M tiles; no K grid axis, no scratch.
        grid = (Mp // tm,)
        in_specs = [
            pl.BlockSpec((tm, K), lambda i: (i, 0)),
            pl.BlockSpec((K, N), lambda i: (0, 0)),
            pl.BlockSpec((1, N), lambda i: (0, 0)),
            pl.BlockSpec((1, N), lambda i: (0, 0)),
        ]
        if has_res:
            in_specs.append(pl.BlockSpec((tm, N), lambda i: (i, 0)))
        out_specs = pl.BlockSpec((tm, N), lambda i: (i, 0))
        kernel = functools.partial(_mm_direct_kernel, relu=relu, has_res=has_res)
        scratch = []
        dims = ("parallel",)
    else:
        # Production-size K: pad K to a 128-quantized tile and reduce over a
        # K grid axis with an f32 VMEM accumulator.
        Kp = _round_up(K, 128)
        tk = _pick_tile(Kp, _TK_CAP, 128)
        if Kp != K:
            args[0] = jnp.pad(args[0], ((0, 0), (0, Kp - K)))
            args[1] = jnp.pad(args[1], ((0, Kp - K), (0, 0)))
        grid = (Mp // tm, Kp // tk)
        in_specs = [
            pl.BlockSpec((tm, tk), lambda i, k: (i, k)),
            pl.BlockSpec((tk, N), lambda i, k: (k, 0)),
            pl.BlockSpec((1, N), lambda i, k: (0, 0)),
            pl.BlockSpec((1, N), lambda i, k: (0, 0)),
        ]
        if has_res:
            in_specs.append(pl.BlockSpec((tm, N), lambda i, k: (i, 0)))
        out_specs = pl.BlockSpec((tm, N), lambda i, k: (i, 0))
        kernel = functools.partial(_mm_ktiled_kernel, relu=relu, has_res=has_res)
        scratch = [pltpu.VMEM((tm, N), jnp.float32)]
        dims = ("parallel", "arbitrary")

    out = pl.pallas_call(
        kernel,
        out_shape=jax.ShapeDtypeStruct((Mp, N), out_dtype),
        grid_spec=pltpu.PrefetchScalarGridSpec(
            num_scalar_prefetch=0,
            grid=grid,
            in_specs=in_specs,
            out_specs=out_specs,
            scratch_shapes=scratch),
        compiler_params=pltpu.CompilerParams(
            dimension_semantics=dims,
            vmem_limit_bytes=_VMEM_LIMIT_BYTES),
    )(*args)
    return out[:M] if Mp != M else out


# ----------------------- fused global-avg-pool + embed -----------------------

def _gap_embed_kernel(x_ref, w_ref, b_ref, o_ref, acc_ref, *, inv_hw):
    j = pl.program_id(0)

    @pl.when(j == 0)
    def _init():
        acc_ref[...] = jnp.zeros_like(acc_ref)

    # embed(mean_hw(x)) is linear -> accumulate per-chunk (chunk_mean @ W).
    part = jnp.sum(x_ref[...].astype(jnp.float32), axis=1) * inv_hw
    acc_ref[...] += jnp.dot(part.astype(jnp.bfloat16), w_ref[...],
                            preferred_element_type=jnp.float32)

    @pl.when(j == pl.num_programs(0) - 1)
    def _fin():
        o_ref[...] = (acc_ref[...] + b_ref[...]).astype(o_ref.dtype)


def gap_embed(x_nhwc, w, b):
    """Global average pool + Linear embed in one pallas_call.

    x: (B, H, W, Cp) bf16 (Cp lane-padded; padded channels are exactly 0),
    w: (C_real, E) f32, b: (E,) f32  ->  (B, E) float32.
    """
    B, H, W, Cp = x_nhwc.shape
    assert Cp % _LANE == 0
    c_real, E = w.shape
    Ep = _round_up(E, _LANE)
    HW = H * W

    Bp = _round_up(B, 8)
    xr = x_nhwc.reshape(B, HW, Cp)
    if Bp != B:
        xr = jnp.pad(xr, ((0, Bp - B), (0, 0), (0, 0)))

    # Tile over HW when it is sublane-aligned; otherwise one full-HW block
    # (full-dim blocks are always legal, no padding pass needed).
    chunk = _pick_tile(HW, 512, 16) if HW % 16 == 0 else HW

    wp = jnp.zeros((Cp, Ep), jnp.float32).at[:c_real, :E].set(w).astype(jnp.bfloat16)
    bp = jnp.zeros((1, Ep), jnp.float32).at[0, :E].set(b)

    out = pl.pallas_call(
        functools.partial(_gap_embed_kernel, inv_hw=1.0 / HW),
        out_shape=jax.ShapeDtypeStruct((Bp, Ep), jnp.float32),
        grid_spec=pltpu.PrefetchScalarGridSpec(
            num_scalar_prefetch=0,
            grid=(HW // chunk,),
            in_specs=[pl.BlockSpec((Bp, chunk, Cp), lambda j: (0, j, 0)),
                      pl.BlockSpec((Cp, Ep), lambda j: (0, 0)),
                      pl.BlockSpec((1, Ep), lambda j: (0, 0))],
            out_specs=pl.BlockSpec((Bp, Ep), lambda j: (0, 0)),
            scratch_shapes=[pltpu.VMEM((Bp, Ep), jnp.float32)]),
        compiler_params=pltpu.CompilerParams(
            dimension_semantics=("arbitrary",),
            vmem_limit_bytes=_VMEM_LIMIT_BYTES),
    )(xr, wp, bp)
    return out[:B, :E]


# ------------------------------ JAX glue -------------------------------------

def _im2col(x_nhwc, kh, kw, stride, pad):
    """Channel-dense im2col; the K zero-tail (to a multiple of 8) is emitted
    inside the same concat so no separate pad pass over the patch slab."""
    if pad:
        x_nhwc = jnp.pad(x_nhwc, ((0, 0), (pad, pad), (pad, pad), (0, 0)))
    B, H, W, C = x_nhwc.shape
    oh = (H - kh) // stride + 1
    ow = (W - kw) // stride + 1
    cols = []
    for i in range(kh):
        for j in range(kw):
            cols.append(
                x_nhwc[:, i:i + stride * oh:stride, j:j + stride * ow:stride, :])
    k_real = kh * kw * C
    k_in = _round_up(k_real, 8)
    if k_in != k_real:
        cols.append(jnp.zeros((B, oh, ow, k_in - k_real), x_nhwc.dtype))
    patches = jnp.concatenate(cols, axis=-1)          # (B, oh, ow, k_in)
    return patches.reshape(B * oh * ow, k_in), (oh, ow), k_in


def conv_bn(x, w, scale, shift, *, stride, pad, relu, residual=None):
    """Conv2d (no bias) + folded eval-mode BN (+ optional fused residual+ReLU).

    x: (B, H, W, Cx) bf16 NHWC (Cx may be lane-padded; padded channels are 0),
    w: (Cout, Cin_real, kh, kw) f32  ->  (B, OH, OW, round_up(Cout,128)) bf16.
    """
    cout, cin_real, kh, kw = w.shape
    B, H, W, cin_x = x.shape
    assert cin_x >= cin_real
    coutp = _round_up(cout, _LANE)

    if kh == 1 and kw == 1 and stride == 1 and pad == 0:
        # 1x1 conv: reshape view only (no im2col, no channel slice); the
        # lane-padded K rows meet zero weight rows so they are inert.
        k_in = cin_x
        patches = x.reshape(B * H * W, cin_x)
        oh, ow = H, W
    else:
        # Spatial conv: drop the lane padding first so K = kh*kw*Cin_real.
        xd = x[..., :cin_real] if cin_x != cin_real else x
        patches, (oh, ow), k_in = _im2col(xd, kh, kw, stride, pad)

    # Weight -> (k_in, coutp), matching im2col's tap-major / channel-minor order.
    w_kmaj = jnp.transpose(w, (2, 3, 1, 0)).reshape(kh * kw * cin_real, cout)
    w2d = jnp.zeros((k_in, coutp), jnp.float32)
    w2d = w2d.at[:kh * kw * cin_real, :cout].set(w_kmaj)
    scale_p = jnp.zeros((coutp,), jnp.float32).at[:cout].set(scale)
    shift_p = jnp.zeros((coutp,), jnp.float32).at[:cout].set(shift)

    res2d = None
    if residual is not None:
        assert residual.shape[-1] == coutp
        res2d = residual.reshape(B * oh * ow, coutp)

    out = fused_matmul(patches, w2d, scale_p, shift_p, relu=relu,
                       residual=res2d, out_dtype=jnp.bfloat16)
    return out.reshape(B, oh, ow, coutp)


def max_pool(x_nhwc, k, stride, pad):
    # TODO(synk): fuse the strided 3x3 max into the stem conv's output path
    # (overlapping row-band reads) once in-kernel im2col lands; a standalone
    # Pallas pool kernel would pay the same HBM round trip, so the
    # overlapping-window pool stays a plain-JAX reduce_window for now.
    return jax.lax.reduce_window(
        x_nhwc, jnp.array(-jnp.inf, x_nhwc.dtype), jax.lax.max,
        window_dimensions=(1, k, k, 1),
        window_strides=(1, stride, stride, 1),
        padding=((0, 0), (pad, pad), (pad, pad), (0, 0)))


def bottleneck(x, p, *, stride=1):
    out = conv_bn(x, **p["c1"], stride=1, pad=0, relu=True)
    out = conv_bn(out, **p["c2"], stride=stride, pad=1, relu=True)
    if "down" in p:
        ident = conv_bn(x, **p["down"], stride=stride, pad=0, relu=False)
    else:
        ident = x
    # residual add + ReLU fused into the c3 conv's matmul epilogue
    return conv_bn(out, **p["c3"], stride=1, pad=0, relu=True, residual=ident)


# --------------------------- parameters (synthetic) ---------------------------

def _conv_bn_params(key, cin, cout, k):
    kw_, ks_, kb_ = jax.random.split(key, 3)
    w = 0.05 * jax.random.normal(kw_, (cout, cin, k, k), jnp.float32)
    # eval-mode BN folded to per-channel affine: y = conv(x)*scale + shift
    scale = 1.0 + 0.1 * jax.random.normal(ks_, (cout,), jnp.float32)
    shift = 0.1 * jax.random.normal(kb_, (cout,), jnp.float32)
    return dict(w=w, scale=scale, shift=shift)


def init_encoder_params(key, embed_size):
    ks = jax.random.split(key, 10)
    p = {}
    p["stem"] = _conv_bn_params(ks[0], 3, 16, 7)        # conv1 7x7/2 + bn + relu
    # TODO(synk): real ResNet-50 has 16 pretrained bottleneck blocks over 4
    # stages; this synthetic backbone keeps a representative downsample block
    # + identity block at scaled-down widths (the same fused Pallas matmul
    # kernel serves every conv of the full net).
    p["block1"] = dict(
        c1=_conv_bn_params(ks[1], 16, 8, 1),
        c2=_conv_bn_params(ks[2], 8, 8, 3),
        c3=_conv_bn_params(ks[3], 8, 32, 1),
        down=_conv_bn_params(ks[4], 16, 32, 1),
    )
    p["block2"] = dict(
        c1=_conv_bn_params(ks[5], 32, 8, 1),
        c2=_conv_bn_params(ks[6], 8, 8, 3),
        c3=_conv_bn_params(ks[7], 8, 32, 1),
    )
    p["embed_w"] = 0.05 * jax.random.normal(ks[8], (32, embed_size), jnp.float32)
    p["embed_b"] = 0.1 * jax.random.normal(ks[9], (embed_size,), jnp.float32)
    return p


# -------------------------------- forward -------------------------------------

def encoder_cnn_forward(images, params):
    """images: (B, 3, H, W) float32 NCHW  ->  (B, embed_size) float32."""
    # One layout change at entry: NCHW -> NHWC, bf16 activations end-to-end.
    x = jnp.transpose(images, (0, 2, 3, 1)).astype(jnp.bfloat16)
    x = conv_bn(x, **params["stem"], stride=2, pad=3, relu=True)
    x = max_pool(x, 3, 2, 1)
    x = bottleneck(x, params["block1"], stride=1)
    x = bottleneck(x, params["block2"], stride=1)
    # GAP (== .view(B, -1) of the (B, C, 1, 1) pooled map) + Linear embed, fused.
    return gap_embed(x, params["embed_w"], params["embed_b"])


if __name__ == "__main__":
    key = jax.random.PRNGKey(0)
    kimg, kparam = jax.random.split(key)
    images = jax.random.normal(kimg, (2, 3, 32, 32), jnp.float32)
    params = init_encoder_params(kparam, embed_size=16)

    feats = jax.jit(encoder_cnn_forward)(images, params)
    feats = jax.block_until_ready(feats)
    assert feats.shape == (2, 16) and feats.dtype == jnp.float32
    print("KERNEL_OK")
</pallas_src>

<mosaic_0001>
module attributes {stable_mosaic.version = 11 : i64} {
  func.func @_mm_direct_kernel(%arg0: i32, %arg1: memref<256x152xbf16, #tpu.memory_space<vmem>>, %arg2: memref<152x128xbf16, #tpu.memory_space<vmem>>, %arg3: memref<1x128xf32, #tpu.memory_space<vmem>>, %arg4: memref<1x128xf32, #tpu.memory_space<vmem>>, %arg5: memref<256x128xbf16, #tpu.memory_space<vmem>>) attributes {dimension_semantics = [#tpu.dimension_semantics<parallel>], iteration_bounds = array<i64: 2>, scalar_prefetch = 0 : i64, scratch_operands = 0 : i64, tpu.core_type = #tpu.core_type<tc>, window_params = [{transform_indices = @transform_0, window_bounds = array<i64: 256, 152>}, {pipeline_mode = #tpu.pipeline_mode<synchronous>, transform_indices = @transform_1, window_bounds = array<i64: 152, 128>}, {pipeline_mode = #tpu.pipeline_mode<synchronous>, transform_indices = @transform_2, window_bounds = array<i64: 1, 128>}, {pipeline_mode = #tpu.pipeline_mode<synchronous>, transform_indices = @transform_3, window_bounds = array<i64: 1, 128>}, {transform_indices = @transform_4, window_bounds = array<i64: 256, 128>}]} {
    %c0 = arith.constant 0 : index
    %c0_0 = arith.constant 0 : index
    %0 = vector.load %arg1[%c0, %c0_0] : memref<256x152xbf16, #tpu.memory_space<vmem>>, vector<256x152xbf16>
    %c0_1 = arith.constant 0 : index
    %c0_2 = arith.constant 0 : index
    %1 = vector.load %arg2[%c0_1, %c0_2] : memref<152x128xbf16, #tpu.memory_space<vmem>>, vector<152x128xbf16>
    %cst = arith.constant dense<0.000000e+00> : vector<256x128xf32>
    %2 = tpu.matmul %0, %1, %cst {dimension_numbers = #tpu.dot_dimension_numbers<[1], [0], [0], [1], [0, 0, 1, 1], [], []>} : vector<256x152xbf16>, vector<152x128xbf16>, vector<256x128xf32> -> vector<256x128xf32>
    %c0_3 = arith.constant 0 : index
    %c0_4 = arith.constant 0 : index
    %3 = vector.load %arg3[%c0_3, %c0_4] : memref<1x128xf32, #tpu.memory_space<vmem>>, vector<1x128xf32>
    %4 = vector.broadcast %3 : vector<1x128xf32> to vector<256x128xf32>
    %5 = arith.mulf %2, %4 : vector<256x128xf32>
    %c0_5 = arith.constant 0 : index
    %c0_6 = arith.constant 0 : index
    %6 = vector.load %arg4[%c0_5, %c0_6] : memref<1x128xf32, #tpu.memory_space<vmem>>, vector<1x128xf32>
    %7 = vector.broadcast %6 : vector<1x128xf32> to vector<256x128xf32>
    %8 = arith.addf %5, %7 : vector<256x128xf32>
    %cst_7 = arith.constant 0.000000e+00 : f32
    %9 = vector.broadcast %cst_7 : f32 to vector<256x128xf32>
    %10 = arith.maximumf %8, %9 : vector<256x128xf32>
    %11 = arith.truncf %10 : vector<256x128xf32> to vector<256x128xbf16>
    %c0_8 = arith.constant 0 : index
    %c0_9 = arith.constant 0 : index
    %12 = vector.load %arg5[%c0_8, %c0_9] : memref<256x128xbf16, #tpu.memory_space<vmem>>, vector<256x128xbf16>
    tpu.vector_store %arg5[%c0_8, %c0_9], %11 {strides = array<i32>} : memref<256x128xbf16, #tpu.memory_space<vmem>>, vector<256x128xbf16>,
    return
  }
  func.func @transform_0(%arg0: i32) -> (i32, i32) {
    %c0_i32 = arith.constant 0 : i32
    %c0_i32_0 = arith.constant 0 : i32
    return %arg0, %c0_i32 : i32, i32
  }
  func.func @transform_1(%arg0: i32) -> (i32, i32) {
    %c0_i32 = arith.constant 0 : i32
    %c0_i32_0 = arith.constant 0 : i32
    %c0_i32_1 = arith.constant 0 : i32
    return %c0_i32, %c0_i32_0 : i32, i32
  }
  func.func @transform_2(%arg0: i32) -> (i32, i32) {
    %c0_i32 = arith.constant 0 : i32
    %c0_i32_0 = arith.constant 0 : i32
    %c0_i32_1 = arith.constant 0 : i32
    return %c0_i32, %c0_i32_0 : i32, i32
  }
  func.func @transform_3(%arg0: i32) -> (i32, i32) {
    %c0_i32 = arith.constant 0 : i32
    %c0_i32_0 = arith.constant 0 : i32
    %c0_i32_1 = arith.constant 0 : i32
    return %c0_i32, %c0_i32_0 : i32, i32
  }
  func.func @transform_4(%arg0: i32) -> (i32, i32) {
    %c0_i32 = arith.constant 0 : i32
    %c0_i32_0 = arith.constant 0 : i32
    return %arg0, %c0_i32 : i32, i32
  }
}

module attributes {stable_mosaic.version = 11 : i64} {
  func.func @_mm_direct_kernel(%arg0: i32, %arg1: memref<64x128xbf16, #tpu.memory_space<vmem>>, %arg2: memref<128x128xbf16, #tpu.memory_space<vmem>>, %arg3: memref<1x128xf32, #tpu.memory_space<vmem>>, %arg4: memref<1x128xf32, #tpu.memory_space<vmem>>, %arg5: memref<64x128xbf16, #tpu.memory_space<vmem>>) attributes {dimension_semantics = [#tpu.dimension_semantics<parallel>], iteration_bounds = array<i64: 2>, scalar_prefetch = 0 : i64, scratch_operands = 0 : i64, tpu.core_type = #tpu.core_type<tc>, window_params = [{transform_indices = @transform_0, window_bounds = array<i64: 64, 128>}, {pipeline_mode = #tpu.pipeline_mode<synchronous>, transform_indices = @transform_1, window_bounds = array<i64: 128, 128>}, {pipeline_mode = #tpu.pipeline_mode<synchronous>, transform_indices = @transform_2, window_bounds = array<i64: 1, 128>}, {pipeline_mode = #tpu.pipeline_mode<synchronous>, transform_indices = @transform_3, window_bounds = array<i64: 1, 128>}, {transform_indices = @transform_4, window_bounds = array<i64: 64, 128>}]} {
    %c0 = arith.constant 0 : index
    %c0_0 = arith.constant 0 : index
    %0 = vector.load %arg1[%c0, %c0_0] : memref<64x128xbf16, #tpu.memory_space<vmem>>, vector<64x128xbf16>
    %c0_1 = arith.constant 0 : index
    %c0_2 = arith.constant 0 : index
    %1 = vector.load %arg2[%c0_1, %c0_2] : memref<128x128xbf16, #tpu.memory_space<vmem>>, vector<128x128xbf16>
    %cst = arith.constant dense<0.000000e+00> : vector<64x128xf32>
    %2 = tpu.matmul %0, %1, %cst {dimension_numbers = #tpu.dot_dimension_numbers<[1], [0], [0], [1], [0, 0, 1, 1], [], []>} : vector<64x128xbf16>, vector<128x128xbf16>, vector<64x128xf32> -> vector<64x128xf32>
    %c0_3 = arith.constant 0 : index
    %c0_4 = arith.constant 0 : index
    %3 = vector.load %arg3[%c0_3, %c0_4] : memref<1x128xf32, #tpu.memory_space<vmem>>, vector<1x128xf32>
    %4 = vector.broadcast %3 : vector<1x128xf32> to vector<64x128xf32>
    %5 = arith.mulf %2, %4 : vector<64x128xf32>
    %c0_5 = arith.constant 0 : index
    %c0_6 = arith.constant 0 : index
    %6 = vector.load %arg4[%c0_5, %c0_6] : memref<1x128xf32, #tpu.memory_space<vmem>>, vector<1x128xf32>
    %7 = vector.broadcast %6 : vector<1x128xf32> to vector<64x128xf32>
    %8 = arith.addf %5, %7 : vector<64x128xf32>
    %cst_7 = arith.constant 0.000000e+00 : f32
    %9 = vector.broadcast %cst_7 : f32 to vector<64x128xf32>
    %10 = arith.maximumf %8, %9 : vector<64x128xf32>
    %11 = arith.truncf %10 : vector<64x128xf32> to vector<64x128xbf16>
    %c0_8 = arith.constant 0 : index
    %c0_9 = arith.constant 0 : index
    %12 = vector.load %arg5[%c0_8, %c0_9] : memref<64x128xbf16, #tpu.memory_space<vmem>>, vector<64x128xbf16>
    tpu.vector_store %arg5[%c0_8, %c0_9], %11 {strides = array<i32>} : memref<64x128xbf16, #tpu.memory_space<vmem>>, vector<64x128xbf16>,
    return
  }
  func.func @transform_0(%arg0: i32) -> (i32, i32) {
    %c0_i32 = arith.constant 0 : i32
    %c0_i32_0 = arith.constant 0 : i32
    return %arg0, %c0_i32 : i32, i32
  }
  func.func @transform_1(%arg0: i32) -> (i32, i32) {
    %c0_i32 = arith.constant 0 : i32
    %c0_i32_0 = arith.constant 0 : i32
    %c0_i32_1 = arith.constant 0 : i32
    return %c0_i32, %c0_i32_0 : i32, i32
  }
  func.func @transform_2(%arg0: i32) -> (i32, i32) {
    %c0_i32 = arith.constant 0 : i32
    %c0_i32_0 = arith.constant 0 : i32
    %c0_i32_1 = arith.constant 0 : i32
    return %c0_i32, %c0_i32_0 : i32, i32
  }
  func.func @transform_3(%arg0: i32) -> (i32, i32) {
    %c0_i32 = arith.constant 0 : i32
    %c0_i32_0 = arith.constant 0 : i32
    %c0_i32_1 = arith.constant 0 : i32
    return %c0_i32, %c0_i32_0 : i32, i32
  }
  func.func @transform_4(%arg0: i32) -> (i32, i32) {
    %c0_i32 = arith.constant 0 : i32
    %c0_i32_0 = arith.constant 0 : i32
    return %arg0, %c0_i32 : i32, i32
  }
}

module attributes {stable_mosaic.version = 11 : i64} {
  func.func @_mm_direct_kernel(%arg0: i32, %arg1: memref<64x72xbf16, #tpu.memory_space<vmem>>, %arg2: memref<72x128xbf16, #tpu.memory_space<vmem>>, %arg3: memref<1x128xf32, #tpu.memory_space<vmem>>, %arg4: memref<1x128xf32, #tpu.memory_space<vmem>>, %arg5: memref<64x128xbf16, #tpu.memory_space<vmem>>) attributes {dimension_semantics = [#tpu.dimension_semantics<parallel>], iteration_bounds = array<i64: 2>, scalar_prefetch = 0 : i64, scratch_operands = 0 : i64, tpu.core_type = #tpu.core_type<tc>, window_params = [{transform_indices = @transform_0, window_bounds = array<i64: 64, 72>}, {pipeline_mode = #tpu.pipeline_mode<synchronous>, transform_indices = @transform_1, window_bounds = array<i64: 72, 128>}, {pipeline_mode = #tpu.pipeline_mode<synchronous>, transform_indices = @transform_2, window_bounds = array<i64: 1, 128>}, {pipeline_mode = #tpu.pipeline_mode<synchronous>, transform_indices = @transform_3, window_bounds = array<i64: 1, 128>}, {transform_indices = @transform_4, window_bounds = array<i64: 64, 128>}]} {
    %c0 = arith.constant 0 : index
    %c0_0 = arith.constant 0 : index
    %0 = vector.load %arg1[%c0, %c0_0] : memref<64x72xbf16, #tpu.memory_space<vmem>>, vector<64x72xbf16>
    %c0_1 = arith.constant 0 : index
    %c0_2 = arith.constant 0 : index
    %1 = vector.load %arg2[%c0_1, %c0_2] : memref<72x128xbf16, #tpu.memory_space<vmem>>, vector<72x128xbf16>
    %cst = arith.constant dense<0.000000e+00> : vector<64x128xf32>
    %2 = tpu.matmul %0, %1, %cst {dimension_numbers = #tpu.dot_dimension_numbers<[1], [0], [0], [1], [0, 0, 1, 1], [], []>} : vector<64x72xbf16>, vector<72x128xbf16>, vector<64x128xf32> -> vector<64x128xf32>
    %c0_3 = arith.constant 0 : index
    %c0_4 = arith.constant 0 : index
    %3 = vector.load %arg3[%c0_3, %c0_4] : memref<1x128xf32, #tpu.memory_space<vmem>>, vector<1x128xf32>
    %4 = vector.broadcast %3 : vector<1x128xf32> to vector<64x128xf32>
    %5 = arith.mulf %2, %4 : vector<64x128xf32>
    %c0_5 = arith.constant 0 : index
    %c0_6 = arith.constant 0 : index
    %6 = vector.load %arg4[%c0_5, %c0_6] : memref<1x128xf32, #tpu.memory_space<vmem>>, vector<1x128xf32>
    %7 = vector.broadcast %6 : vector<1x128xf32> to vector<64x128xf32>
    %8 = arith.addf %5, %7 : vector<64x128xf32>
    %cst_7 = arith.constant 0.000000e+00 : f32
    %9 = vector.broadcast %cst_7 : f32 to vector<64x128xf32>
    %10 = arith.maximumf %8, %9 : vector<64x128xf32>
    %11 = arith.truncf %10 : vector<64x128xf32> to vector<64x128xbf16>
    %c0_8 = arith.constant 0 : index
    %c0_9 = arith.constant 0 : index
    %12 = vector.load %arg5[%c0_8, %c0_9] : memref<64x128xbf16, #tpu.memory_space<vmem>>, vector<64x128xbf16>
    tpu.vector_store %arg5[%c0_8, %c0_9], %11 {strides = array<i32>} : memref<64x128xbf16, #tpu.memory_space<vmem>>, vector<64x128xbf16>,
    return
  }
  func.func @transform_0(%arg0: i32) -> (i32, i32) {
    %c0_i32 = arith.constant 0 : i32
    %c0_i32_0 = arith.constant 0 : i32
    return %arg0, %c0_i32 : i32, i32
  }
  func.func @transform_1(%arg0: i32) -> (i32, i32) {
    %c0_i32 = arith.constant 0 : i32
    %c0_i32_0 = arith.constant 0 : i32
    %c0_i32_1 = arith.constant 0 : i32
    return %c0_i32, %c0_i32_0 : i32, i32
  }
  func.func @transform_2(%arg0: i32) -> (i32, i32) {
    %c0_i32 = arith.constant 0 : i32
    %c0_i32_0 = arith.constant 0 : i32
    %c0_i32_1 = arith.constant 0 : i32
    return %c0_i32, %c0_i32_0 : i32, i32
  }
  func.func @transform_3(%arg0: i32) -> (i32, i32) {
    %c0_i32 = arith.constant 0 : i32
    %c0_i32_0 = arith.constant 0 : i32
    %c0_i32_1 = arith.constant 0 : i32
    return %c0_i32, %c0_i32_0 : i32, i32
  }
  func.func @transform_4(%arg0: i32) -> (i32, i32) {
    %c0_i32 = arith.constant 0 : i32
    %c0_i32_0 = arith.constant 0 : i32
    return %arg0, %c0_i32 : i32, i32
  }
}

module attributes {stable_mosaic.version = 11 : i64} {
  func.func @_mm_direct_kernel(%arg0: i32, %arg1: memref<64x128xbf16, #tpu.memory_space<vmem>>, %arg2: memref<128x128xbf16, #tpu.memory_space<vmem>>, %arg3: memref<1x128xf32, #tpu.memory_space<vmem>>, %arg4: memref<1x128xf32, #tpu.memory_space<vmem>>, %arg5: memref<64x128xbf16, #tpu.memory_space<vmem>>) attributes {dimension_semantics = [#tpu.dimension_semantics<parallel>], iteration_bounds = array<i64: 2>, scalar_prefetch = 0 : i64, scratch_operands = 0 : i64, tpu.core_type = #tpu.core_type<tc>, window_params = [{transform_indices = @transform_0, window_bounds = array<i64: 64, 128>}, {pipeline_mode = #tpu.pipeline_mode<synchronous>, transform_indices = @transform_1, window_bounds = array<i64: 128, 128>}, {pipeline_mode = #tpu.pipeline_mode<synchronous>, transform_indices = @transform_2, window_bounds = array<i64: 1, 128>}, {pipeline_mode = #tpu.pipeline_mode<synchronous>, transform_indices = @transform_3, window_bounds = array<i64: 1, 128>}, {transform_indices = @transform_4, window_bounds = array<i64: 64, 128>}]} {
    %c0 = arith.constant 0 : index
    %c0_0 = arith.constant 0 : index
    %0 = vector.load %arg1[%c0, %c0_0] : memref<64x128xbf16, #tpu.memory_space<vmem>>, vector<64x128xbf16>
    %c0_1 = arith.constant 0 : index
    %c0_2 = arith.constant 0 : index
    %1 = vector.load %arg2[%c0_1, %c0_2] : memref<128x128xbf16, #tpu.memory_space<vmem>>, vector<128x128xbf16>
    %cst = arith.constant dense<0.000000e+00> : vector<64x128xf32>
    %2 = tpu.matmul %0, %1, %cst {dimension_numbers = #tpu.dot_dimension_numbers<[1], [0], [0], [1], [0, 0, 1, 1], [], []>} : vector<64x128xbf16>, vector<128x128xbf16>, vector<64x128xf32> -> vector<64x128xf32>
    %c0_3 = arith.constant 0 : index
    %c0_4 = arith.constant 0 : index
    %3 = vector.load %arg3[%c0_3, %c0_4] : memref<1x128xf32, #tpu.memory_space<vmem>>, vector<1x128xf32>
    %4 = vector.broadcast %3 : vector<1x128xf32> to vector<64x128xf32>
    %5 = arith.mulf %2, %4 : vector<64x128xf32>
    %c0_5 = arith.constant 0 : index
    %c0_6 = arith.constant 0 : index
    %6 = vector.load %arg4[%c0_5, %c0_6] : memref<1x128xf32, #tpu.memory_space<vmem>>, vector<1x128xf32>
    %7 = vector.broadcast %6 : vector<1x128xf32> to vector<64x128xf32>
    %8 = arith.addf %5, %7 : vector<64x128xf32>
    %9 = arith.truncf %8 : vector<64x128xf32> to vector<64x128xbf16>
    %c0_7 = arith.constant 0 : index
    %c0_8 = arith.constant 0 : index
    %10 = vector.load %arg5[%c0_7, %c0_8] : memref<64x128xbf16, #tpu.memory_space<vmem>>, vector<64x128xbf16>
    tpu.vector_store %arg5[%c0_7, %c0_8], %9 {strides = array<i32>} : memref<64x128xbf16, #tpu.memory_space<vmem>>, vector<64x128xbf16>,
    return
  }
  func.func @transform_0(%arg0: i32) -> (i32, i32) {
    %c0_i32 = arith.constant 0 : i32
    %c0_i32_0 = arith.constant 0 : i32
    return %arg0, %c0_i32 : i32, i32
  }
  func.func @transform_1(%arg0: i32) -> (i32, i32) {
    %c0_i32 = arith.constant 0 : i32
    %c0_i32_0 = arith.constant 0 : i32
    %c0_i32_1 = arith.constant 0 : i32
    return %c0_i32, %c0_i32_0 : i32, i32
  }
  func.func @transform_2(%arg0: i32) -> (i32, i32) {
    %c0_i32 = arith.constant 0 : i32
    %c0_i32_0 = arith.constant 0 : i32
    %c0_i32_1 = arith.constant 0 : i32
    return %c0_i32, %c0_i32_0 : i32, i32
  }
  func.func @transform_3(%arg0: i32) -> (i32, i32) {
    %c0_i32 = arith.constant 0 : i32
    %c0_i32_0 = arith.constant 0 : i32
    %c0_i32_1 = arith.constant 0 : i32
    return %c0_i32, %c0_i32_0 : i32, i32
  }
  func.func @transform_4(%arg0: i32) -> (i32, i32) {
    %c0_i32 = arith.constant 0 : i32
    %c0_i32_0 = arith.constant 0 : i32
    return %arg0, %c0_i32 : i32, i32
  }
}

module attributes {stable_mosaic.version = 11 : i64} {
  func.func @_mm_direct_kernel(%arg0: i32, %arg1: memref<64x128xbf16, #tpu.memory_space<vmem>>, %arg2: memref<128x128xbf16, #tpu.memory_space<vmem>>, %arg3: memref<1x128xf32, #tpu.memory_space<vmem>>, %arg4: memref<1x128xf32, #tpu.memory_space<vmem>>, %arg5: memref<64x128xbf16, #tpu.memory_space<vmem>>, %arg6: memref<64x128xbf16, #tpu.memory_space<vmem>>) attributes {dimension_semantics = [#tpu.dimension_semantics<parallel>], iteration_bounds = array<i64: 2>, scalar_prefetch = 0 : i64, scratch_operands = 0 : i64, tpu.core_type = #tpu.core_type<tc>, window_params = [{transform_indices = @transform_0, window_bounds = array<i64: 64, 128>}, {pipeline_mode = #tpu.pipeline_mode<synchronous>, transform_indices = @transform_1, window_bounds = array<i64: 128, 128>}, {pipeline_mode = #tpu.pipeline_mode<synchronous>, transform_indices = @transform_2, window_bounds = array<i64: 1, 128>}, {pipeline_mode = #tpu.pipeline_mode<synchronous>, transform_indices = @transform_3, window_bounds = array<i64: 1, 128>}, {transform_indices = @transform_4, window_bounds = array<i64: 64, 128>}, {transform_indices = @transform_5, window_bounds = array<i64: 64, 128>}]} {
    %c0 = arith.constant 0 : index
    %c0_0 = arith.constant 0 : index
    %0 = vector.load %arg1[%c0, %c0_0] : memref<64x128xbf16, #tpu.memory_space<vmem>>, vector<64x128xbf16>
    %c0_1 = arith.constant 0 : index
    %c0_2 = arith.constant 0 : index
    %1 = vector.load %arg2[%c0_1, %c0_2] : memref<128x128xbf16, #tpu.memory_space<vmem>>, vector<128x128xbf16>
    %cst = arith.constant dense<0.000000e+00> : vector<64x128xf32>
    %2 = tpu.matmul %0, %1, %cst {dimension_numbers = #tpu.dot_dimension_numbers<[1], [0], [0], [1], [0, 0, 1, 1], [], []>} : vector<64x128xbf16>, vector<128x128xbf16>, vector<64x128xf32> -> vector<64x128xf32>
    %c0_3 = arith.constant 0 : index
    %c0_4 = arith.constant 0 : index
    %3 = vector.load %arg3[%c0_3, %c0_4] : memref<1x128xf32, #tpu.memory_space<vmem>>, vector<1x128xf32>
    %4 = vector.broadcast %3 : vector<1x128xf32> to vector<64x128xf32>
    %5 = arith.mulf %2, %4 : vector<64x128xf32>
    %c0_5 = arith.constant 0 : index
    %c0_6 = arith.constant 0 : index
    %6 = vector.load %arg4[%c0_5, %c0_6] : memref<1x128xf32, #tpu.memory_space<vmem>>, vector<1x128xf32>
    %7 = vector.broadcast %6 : vector<1x128xf32> to vector<64x128xf32>
    %8 = arith.addf %5, %7 : vector<64x128xf32>
    %c0_7 = arith.constant 0 : index
    %c0_8 = arith.constant 0 : index
    %9 = vector.load %arg5[%c0_7, %c0_8] : memref<64x128xbf16, #tpu.memory_space<vmem>>, vector<64x128xbf16>
    %10 = arith.extf %9 : vector<64x128xbf16> to vector<64x128xf32>
    %11 = arith.addf %8, %10 : vector<64x128xf32>
    %cst_9 = arith.constant 0.000000e+00 : f32
    %12 = vector.broadcast %cst_9 : f32 to vector<64x128xf32>
    %13 = arith.maximumf %11, %12 : vector<64x128xf32>
    %14 = arith.truncf %13 : vector<64x128xf32> to vector<64x128xbf16>
    %c0_10 = arith.constant 0 : index
    %c0_11 = arith.constant 0 : index
    %15 = vector.load %arg6[%c0_10, %c0_11] : memref<64x128xbf16, #tpu.memory_space<vmem>>, vector<64x128xbf16>
    tpu.vector_store %arg6[%c0_10, %c0_11], %14 {strides = array<i32>} : memref<64x128xbf16, #tpu.memory_space<vmem>>, vector<64x128xbf16>,
    return
  }
  func.func @transform_0(%arg0: i32) -> (i32, i32) {
    %c0_i32 = arith.constant 0 : i32
    %c0_i32_0 = arith.constant 0 : i32
    return %arg0, %c0_i32 : i32, i32
  }
  func.func @transform_1(%arg0: i32) -> (i32, i32) {
    %c0_i32 = arith.constant 0 : i32
    %c0_i32_0 = arith.constant 0 : i32
    %c0_i32_1 = arith.constant 0 : i32
    return %c0_i32, %c0_i32_0 : i32, i32
  }
  func.func @transform_2(%arg0: i32) -> (i32, i32) {
    %c0_i32 = arith.constant 0 : i32
    %c0_i32_0 = arith.constant 0 : i32
    %c0_i32_1 = arith.constant 0 : i32
    return %c0_i32, %c0_i32_0 : i32, i32
  }
  func.func @transform_3(%arg0: i32) -> (i32, i32) {
    %c0_i32 = arith.constant 0 : i32
    %c0_i32_0 = arith.constant 0 : i32
    %c0_i32_1 = arith.constant 0 : i32
    return %c0_i32, %c0_i32_0 : i32, i32
  }
  func.func @transform_4(%arg0: i32) -> (i32, i32) {
    %c0_i32 = arith.constant 0 : i32
    %c0_i32_0 = arith.constant 0 : i32
    return %arg0, %c0_i32 : i32, i32
  }
  func.func @transform_5(%arg0: i32) -> (i32, i32) {
    %c0_i32 = arith.constant 0 : i32
    %c0_i32_0 = arith.constant 0 : i32
    return %arg0, %c0_i32 : i32, i32
  }
}

module attributes {stable_mosaic.version = 11 : i64} {
  func.func @_gap_embed_kernel(%arg0: i32, %arg1: memref<8x64x128xbf16, #tpu.memory_space<vmem>>, %arg2: memref<128x128xbf16, #tpu.memory_space<vmem>>, %arg3: memref<1x128xf32, #tpu.memory_space<vmem>>, %arg4: memref<8x128xf32, #tpu.memory_space<vmem>>, %arg5: memref<8x128xf32, #tpu.memory_space<vmem>>) attributes {dimension_semantics = [#tpu.dimension_semantics<arbitrary>], iteration_bounds = array<i64: 1>, scalar_prefetch = 0 : i64, scratch_operands = 1 : i64, tpu.core_type = #tpu.core_type<tc>, window_params = [{transform_indices = @transform_0, window_bounds = array<i64: 8, 64, 128>}, {pipeline_mode = #tpu.pipeline_mode<synchronous>, transform_indices = @transform_1, window_bounds = array<i64: 128, 128>}, {pipeline_mode = #tpu.pipeline_mode<synchronous>, transform_indices = @transform_2, window_bounds = array<i64: 1, 128>}, {pipeline_mode = #tpu.pipeline_mode<synchronous>, transform_indices = @transform_3, window_bounds = array<i64: 8, 128>}]} {
    %c0_i32 = arith.constant 0 : i32
    %0 = arith.cmpi eq, %arg0, %c0_i32 : i32
    %1 = arith.extui %0 : i1 to i32
    %c0_i32_0 = arith.constant 0 : i32
    %2 = arith.cmpi ne, %1, %c0_i32_0 : i32
    scf.if %2 {
      %cst_13 = arith.constant 0.000000e+00 : f32
      %17 = vector.broadcast %cst_13 : f32 to vector<8x128xf32>
      %c0_14 = arith.constant 0 : index
      %c0_15 = arith.constant 0 : index
      %18 = vector.load %arg5[%c0_14, %c0_15] : memref<8x128xf32, #tpu.memory_space<vmem>>, vector<8x128xf32>
      tpu.vector_store %arg5[%c0_14, %c0_15], %17 {strides = array<i32>} : memref<8x128xf32, #tpu.memory_space<vmem>>, vector<8x128xf32>,
    } else {
    }
    %c0 = arith.constant 0 : index
    %c0_1 = arith.constant 0 : index
    %c0_2 = arith.constant 0 : index
    %3 = vector.load %arg1[%c0, %c0_1, %c0_2] : memref<8x64x128xbf16, #tpu.memory_space<vmem>>, vector<8x64x128xbf16>
    %4 = arith.extf %3 : vector<8x64x128xbf16> to vector<8x64x128xf32>
    %cst = arith.constant dense<0.000000e+00> : vector<8x128xf32>
    %5 = vector.multi_reduction <add>, %4, %cst [1] : vector<8x64x128xf32> to vector<8x128xf32>
    %cst_3 = arith.constant 1.562500e-02 : f32
    %6 = vector.broadcast %cst_3 : f32 to vector<8x128xf32>
    %7 = arith.mulf %5, %6 : vector<8x128xf32>
    %c0_4 = arith.constant 0 : index
    %c0_5 = arith.constant 0 : index
    %8 = vector.load %arg5[%c0_4, %c0_5] : memref<8x128xf32, #tpu.memory_space<vmem>>, vector<8x128xf32>
    %9 = arith.truncf %7 : vector<8x128xf32> to vector<8x128xbf16>
    %c0_6 = arith.constant 0 : index
    %c0_7 = arith.constant 0 : index
    %10 = vector.load %arg2[%c0_6, %c0_7] : memref<128x128xbf16, #tpu.memory_space<vmem>>, vector<128x128xbf16>
    %cst_8 = arith.constant dense<0.000000e+00> : vector<8x128xf32>
    %11 = tpu.matmul %9, %10, %cst_8 {dimension_numbers = #tpu.dot_dimension_numbers<[1], [0], [0], [1], [0, 0, 1, 1], [], []>} : vector<8x128xbf16>, vector<128x128xbf16>, vector<8x128xf32> -> vector<8x128xf32>
    %12 = arith.addf %8, %11 : vector<8x128xf32>
    %c0_9 = arith.constant 0 : index
    %c0_10 = arith.constant 0 : index
    %13 = vector.load %arg5[%c0_9, %c0_10] : memref<8x128xf32, #tpu.memory_space<vmem>>, vector<8x128xf32>
    tpu.vector_store %arg5[%c0_9, %c0_10], %12 {strides = array<i32>} : memref<8x128xf32, #tpu.memory_space<vmem>>, vector<8x128xf32>,
    %c0_i32_11 = arith.constant 0 : i32
    %14 = arith.cmpi eq, %arg0, %c0_i32_11 : i32
    %15 = arith.extui %14 : i1 to i32
    %c0_i32_12 = arith.constant 0 : i32
    %16 = arith.cmpi ne, %15, %c0_i32_12 : i32
    scf.if %16 {
      %c0_13 = arith.constant 0 : index
      %c0_14 = arith.constant 0 : index
      %17 = vector.load %arg5[%c0_13, %c0_14] : memref<8x128xf32, #tpu.memory_space<vmem>>, vector<8x128xf32>
      %c0_15 = arith.constant 0 : index
      %c0_16 = arith.constant 0 : index
      %18 = vector.load %arg3[%c0_15, %c0_16] : memref<1x128xf32, #tpu.memory_space<vmem>>, vector<1x128xf32>
      %19 = vector.broadcast %18 : vector<1x128xf32> to vector<8x128xf32>
      %20 = arith.addf %17, %19 : vector<8x128xf32>
      %c0_17 = arith.constant 0 : index
      %c0_18 = arith.constant 0 : index
      %21 = vector.load %arg4[%c0_17, %c0_18] : memref<8x128xf32, #tpu.memory_space<vmem>>, vector<8x128xf32>
      tpu.vector_store %arg4[%c0_17, %c0_18], %20 {strides = array<i32>} : memref<8x128xf32, #tpu.memory_space<vmem>>, vector<8x128xf32>,
    } else {
    }
    return
  }
  func.func @transform_0(%arg0: i32) -> (i32, i32, i32) {
    %c0_i32 = arith.constant 0 : i32
    %c0_i32_0 = arith.constant 0 : i32
    %c0_i32_1 = arith.constant 0 : i32
    return %c0_i32, %arg0, %c0_i32_0 : i32, i32, i32
  }
  func.func @transform_1(%arg0: i32) -> (i32, i32) {
    %c0_i32 = arith.constant 0 : i32
    %c0_i32_0 = arith.constant 0 : i32
    %c0_i32_1 = arith.constant 0 : i32
    return %c0_i32, %c0_i32_0 : i32, i32
  }
  func.func @transform_2(%arg0: i32) -> (i32, i32) {
    %c0_i32 = arith.constant 0 : i32
    %c0_i32_0 = arith.constant 0 : i32
    %c0_i32_1 = arith.constant 0 : i32
    return %c0_i32, %c0_i32_0 : i32, i32
  }
  func.func @transform_3(%arg0: i32) -> (i32, i32) {
    %c0_i32 = arith.constant 0 : i32
    %c0_i32_0 = arith.constant 0 : i32
    %c0_i32_1 = arith.constant 0 : i32
    return %c0_i32, %c0_i32_0 : i32, i32
  }
}

</mosaic_0001>

<bundles_post_ra>
// kernel: encoder_cnn_forward.10
= control target key start
LH: loop header
LB: loop body
LE: loop exit
PB: predicated region body
PF: predicated region fallthrough
CT: control target
= control target key end

     0   :  { %s591_s15 = smov 0   ;;  %s645_s0 = inlined_call_operand.vmem [shape: bf16[128,128], index: 0, kind: input, shape index: {}]   ;;  %s646_s1 = inlined_call_operand.vmem [shape: bf16[128,128], index: 1, kind: input, shape index: {}]   ;;  %s647_s2 = inlined_call_operand.vmem [shape: f32[1,128], index: 2, kind: input, shape index: {}]   ;;  %s648_s3 = inlined_call_operand.vmem [shape: f32[1,128], index: 3, kind: input, shape index: {}]   ;;  %s649_s4 = inlined_call_operand.vmem [shape: bf16[128,128], index: 4, kind: output, shape index: {}]  }
   0x1 LB: > { %s430_s16 = sadd.s32 4294967295, %s564_s15   ;;  %p434_p0 = scmp.ge.s32.totalorder %s564_s15, 1  ;;  %s564_s15 = sphi %s591_s15, %s14_s15  }
   0x2   : > { %p163_p1 = scmp.lt.s32.totalorder %s564_s15, 3 }
   0x4   : > { %p164_p2 = pnand %p434_p0, %p163_p1 }
   0x5   : > { %s435_s25 = sshll.u32 (!%p164_p2), %s430_s16, 3 }
   0x6   : > { %167 = sbr.rel (%p164_p2) target bundleno = 194 (0xc2), region = 36  ;;  %p190_p3 = scmp.lt.s32.totalorder (!%p164_p2), %s435_s25, 15 }
   0xb   : > { %v500_v0 = vld [vmem:[%s646_s1 + $0x38] sm:$0xff]  ;;  %v499_v1 = vld [vmem:[%s646_s1 + $0x30] sm:$0xff]  ;;  %v498_v2 = vld [vmem:[%s646_s1 + $0x28] sm:$0xff]  ;;  %s651_s25 = smov (!%p190_p3, %s435_s25), 15 }
   0xc   : > { %297 = vmatpush.bf16.msra.mxu0 %v500_v0  ;;  %524 = vmatpush.bf16.msra.mxu1 %v500_v0  ;;  %v497_v3 = vld [vmem:[%s646_s1 + $0x20] sm:$0xff]  ;;  %v496_v4 = vld [vmem:[%s646_s1 + $0x18] sm:$0xff]  ;;  %v495_v5 = vld [vmem:[%s646_s1 + $0x10] sm:$0xff]  ;;  %s436_s6 = sshll.u32 %s651_s25, 2 }
   0xd   : > { %525 = vmatpush.bf16.msra.mxu2 %v500_v0  ;;  %526 = vmatpush.bf16.msra.mxu3 %v500_v0  ;;  %v494_v6 = vld [vmem:[%s646_s1 + $0x8] sm:$0xff]  ;;  %v493_v7 = vld [vmem:[%s646_s1] sm:$0xff]  ;;  %s193_s11 = scalar_lea.vmem %s645_s0, %s436_s6  ;;  %s199_s19 = scalar_lea.vmem %s649_s4, %s436_s6 }
   0xe   : > { %v489_v8 = vld [vmem:[%s193_s11] sm:$0xff]  ;;  %v490_v9 = vld [vmem:[%s193_s11 + $0x8] sm:$0xff]  ;;  %v491_v10 = vld [vmem:[%s193_s11 + $0x10] sm:$0xff] }
   0xf   : > { %v492_v11 = vld [vmem:[%s193_s11 + $0x18] sm:$0xff]  ;;  %v556_v14 = vld [vmem:[%s647_s2] ss:$0 sm:$0xff] }
  0x10   : > { %298 = vmatpush.bf16.msra.mxu0 %v499_v1  ;;  %527 = vmatpush.bf16.msra.mxu1 %v499_v1  ;;  %v557_v16 = vld [vmem:[%s648_s3] ss:$0 sm:$0xff] }
  0x11   : > { %528 = vmatpush.bf16.msra.mxu2 %v499_v1  ;;  %529 = vmatpush.bf16.msra.mxu3 %v499_v1 }
  0x14   : > { %299 = vmatpush.bf16.msra.mxu0 %v498_v2  ;;  %530 = vmatpush.bf16.msra.mxu1 %v498_v2 }
  0x15   : > { %531 = vmatpush.bf16.msra.mxu2 %v498_v2  ;;  %532 = vmatpush.bf16.msra.mxu3 %v498_v2 }
  0x18   : > { %300 = vmatpush.bf16.msra.mxu0 %v497_v3  ;;  %533 = vmatpush.bf16.msra.mxu1 %v497_v3 }
  0x19   : > { %534 = vmatpush.bf16.msra.mxu2 %v497_v3  ;;  %535 = vmatpush.bf16.msra.mxu3 %v497_v3 }
  0x1c   : > { %301 = vmatpush.bf16.msra.mxu0 %v496_v4  ;;  %536 = vmatpush.bf16.msra.mxu1 %v496_v4 }
  0x1d   : > { %537 = vmatpush.bf16.msra.mxu2 %v496_v4  ;;  %538 = vmatpush.bf16.msra.mxu3 %v496_v4 }
  0x20   : > { %302 = vmatpush.bf16.msra.mxu0 %v495_v5  ;;  %539 = vmatpush.bf16.msra.mxu1 %v495_v5 }
  0x21   : > { %540 = vmatpush.bf16.msra.mxu2 %v495_v5  ;;  %541 = vmatpush.bf16.msra.mxu3 %v495_v5 }
  0x24   : > { %303 = vmatpush.bf16.msra.mxu0 %v494_v6  ;;  %542 = vmatpush.bf16.msra.mxu1 %v494_v6 }
  0x25   : > { %543 = vmatpush.bf16.msra.mxu2 %v494_v6  ;;  %544 = vmatpush.bf16.msra.mxu3 %v494_v6 }
  0x28   : > { %304 = vmatpush.bf16.msra.mxu0 %v493_v7  ;;  %545 = vmatpush.bf16.msra.mxu1 %v493_v7 }
  0x29   : > { %546 = vmatpush.bf16.msra.mxu2 %v493_v7  ;;  %547 = vmatpush.bf16.msra.mxu3 %v493_v7 }
  0x2b   : > { %305 = vmatmul.bf16.vlgmr.msra.gmra.mxu0 %v489_v8  ;;  %310 = vmatmul.bf16.vlgmr.msra.gmra.mxu1 %v490_v9 }
  0x2c   : > { %315 = vmatmul.bf16.vlgmr.msra.gmra.mxu2 %v491_v10  ;;  %320 = vmatmul.bf16.vlgmr.msra.gmra.mxu3 %v492_v11 }
  0xa8   : > { %v306_v12 = vpop.f32.mrf.mxu0  ;;  %v311_v13 = vpop.f32.mrf.mxu1 }
  0xa9   : > { %v330_v15 = vmul.f32 %v556_v14, %v306_v12  ;;  %v332_v17 = vmul.f32 %v556_v14, %v311_v13 }
  0xab   : > { %v342_v22 = vadd.f32 %v557_v16, %v330_v15  ;;  %v344_v23 = vadd.f32 %v557_v16, %v332_v17 }
  0xad   : > { %v350_v30 = vmax.f32 %v342_v22, 0.0  ;;  %v352_v31 = vmax.f32 %v344_v23, 0.0 }
  0xaf   : > { %v316_v18 = vpop.f32.mrf.mxu2  ;;  %v321_v19 = vpop.f32.mrf.mxu3 }
  0xb0   : > { %v308_v20 = vpop.f32.mrf.mxu0  ;;  %v313_v21 = vpop.f32.mrf.mxu1  ;;  %v334_v28 = vmul.f32 %v556_v14, %v316_v18  ;;  %v336_v29 = vmul.f32 %v556_v14, %v321_v19 }
  0xb1   : > { %v331_v24 = vmul.f32 %v556_v14, %v308_v20  ;;  %v333_v25 = vmul.f32 %v556_v14, %v313_v21 }
  0xb2   : > { %v346_v38 = vadd.f32 %v557_v16, %v334_v28  ;;  %v348_v39 = vadd.f32 %v557_v16, %v336_v29 }
  0xb3   : > { %v343_v26 = vadd.f32 %v557_v16, %v331_v24  ;;  %v345_v27 = vadd.f32 %v557_v16, %v333_v25 }
  0xb4   : > { %v354_v44 = vmax.f32 %v346_v38, 0.0  ;;  %v356_v45 = vmax.f32 %v348_v39, 0.0 }
  0xb5   : > { %v351_v32 = vmax.f32 %v343_v26, 0.0  ;;  %v353_v33 = vmax.f32 %v345_v27, 0.0 }
  0xb7   : > { %v504_v34 = vpack.c.bf16 %v351_v32, %v350_v30  ;;  %v509_v35 = vpack.c.bf16 %v353_v33, %v352_v31  ;;  %v318_v36 = vpop.f32.mrf.mxu2  ;;  %v323_v37 = vpop.f32.mrf.mxu3 }
  0xb8   : > { %v335_v40 = vmul.f32 %v556_v14, %v318_v36  ;;  %v337_v41 = vmul.f32 %v556_v14, %v323_v37 }
  0xb9   : > { %505 = vst [vmem:[%s199_s19] sm:$0xff] %v504_v34  }
  0xba   : > { %521 = vst [vmem:[%s199_s19 + $0x8] sm:$0xff] %v509_v35   ;;  %v347_v42 = vadd.f32 %v557_v16, %v335_v40  ;;  %v349_v43 = vadd.f32 %v557_v16, %v337_v41 }
  0xbc   : > { %v355_v46 = vmax.f32 %v347_v42, 0.0  ;;  %v357_v47 = vmax.f32 %v349_v43, 0.0 }
  0xbe   : > { %v514_v48 = vpack.c.bf16 %v355_v46, %v354_v44  ;;  %v519_v49 = vpack.c.bf16 %v357_v47, %v356_v45 }
  0xc0   : > { %522 = vst [vmem:[%s199_s19 + $0x10] sm:$0xff] %v514_v48  }
  0xc1   : > { %523 = vst [vmem:[%s199_s19 + $0x18] sm:$0xff] %v519_v49  }
  0xc2 PF: > { %s14_s15 = sadd.s32 1, %s564_s15  }
  0xc3   : > { %p11_p4 = scmp.ge.s32.totalorder %s14_s15, 4  }
  0xc5   :  { %13 = sbr.rel (!%p11_p4) target bundleno = 1 (0x1), region = 66 }

// kernel: encoder_cnn_forward.9
= control target key start
LH: loop header
LB: loop body
LE: loop exit
PB: predicated region body
PF: predicated region fallthrough
CT: control target
= control target key end

     0   :  { %s1294_s15 = smov 0   ;;  %s1525_s0 = inlined_call_operand.vmem [shape: bf16[512,152], index: 0, kind: input, shape index: {}]   ;;  %s1526_s1 = inlined_call_operand.vmem [shape: bf16[152,128], index: 1, kind: input, shape index: {}]   ;;  %s1527_s2 = inlined_call_operand.vmem [shape: f32[1,128], index: 2, kind: input, shape index: {}]   ;;  %s1528_s3 = inlined_call_operand.vmem [shape: f32[1,128], index: 3, kind: input, shape index: {}]   ;;  %s1529_s4 = inlined_call_operand.vmem [shape: bf16[512,128], index: 4, kind: output, shape index: {}]  }
   0x1 LB: > { %s912_s16 = sadd.s32 4294967295, %s1267_s15   ;;  %p916_p0 = scmp.ge.s32.totalorder %s1267_s15, 1  ;;  %s1267_s15 = sphi %s1294_s15, %s14_s15  }
   0x2   : > { %p164_p1 = scmp.lt.s32.totalorder %s1267_s15, 3 }
   0x4   : > { %p165_p2 = pnand %p916_p0, %p164_p1 }
   0x5   : > { %s917_s21 = sshll.u32 (!%p165_p2), %s912_s16, 5 }
   0x6   : > { %168 = sbr.rel (%p165_p2) target bundleno = 307 (0x133), region = 36  ;;  %p192_p3 = scmp.lt.s32.totalorder (!%p165_p2), %s917_s21, 63 }
   0xb   : > { %v1144_v0 = vld [vmem:[%s1526_s1 + $0x38] sm:$0xff]  ;;  %v255_v1 = vld [vmem:[%s1526_s1 + $0x48] sm:$0xf]  ;;  %vm506_vm0 = vcmask 1043456   ;;  %v1143_v3 = vld [vmem:[%s1526_s1 + $0x30] sm:$0xff]  ;;  %s1531_s21 = smov (!%p192_p3, %s917_s21), 63 }
   0xc   : > { %v437_v2 = vunpack.c.l.b16 %v255_v1  ;;  %510 = vmatpush.bf16.msra.mxu0 %v1144_v0  ;;  %1241 = vmatpush.bf16.msra.mxu2 %v1144_v0  ;;  %s1104_s24 = sshll.u32 %s1531_s21, 3  ;;  %v1145_v6 = vld [vmem:[%s1526_s1 + $0x40] sm:$0xff]  ;;  %v1142_v7 = vld [vmem:[%s1526_s1 + $0x28] sm:$0xff]  ;;  %vm457_vm1 = vcmask 195584   ;;  %v1140_v15 = vld [vmem:[%s1526_s1 + $0x18] sm:$0xff]  ;;  %s921_s22 = sshll.u32 %s1531_s21, 2 }
   0xd   : > { %s1323_s5 = scalar_lea.vmem %s1525_s0, %s1104_s24  ;;  %v1141_v12 = vld [vmem:[%s1526_s1 + $0x20] sm:$0xff]  ;;  %v1139_v16 = vld [vmem:[%s1526_s1 + $0x10] sm:$0xff]  ;;  %v1138_v17 = vld [vmem:[%s1526_s1 + $0x8] sm:$0xff]  ;;  %s1442_s25 = scalar_lea.vmem %s1529_s4, %s921_s22 }
   0xe   : > { %v447_v4 = vpack.c.b16 %v437_v2, %v437_v2  ;;  %v1105_v8 = vld [vmem:[%s1323_s5 + $0x4] sm:$0xf]  ;;  %v926_v9 = vld [vmem:[%s1323_s5 + $0x8] sm:$0xf0]  ;;  %v1123_v11 = vld [vmem:[%s1323_s5 + $0x94] sm:$0xf] }
   0xf   : > { %v929_v10 = vor.u32 %v1105_v8, %v926_v9  ;;  %v998_v13 = vld [vmem:[%s1323_s5 + $0x98] sm:$0xf0]  ;;  %v1107_v18 = vld [vmem:[%s1323_s5 + $0x14] sm:$0xf]  ;;  %v1125_v20 = vld [vmem:[%s1323_s5 + $0xa4] sm:$0xf] }
  0x10   : > { %v508_v5 = vsel %vm506_vm0, %v447_v4, 0  ;;  %511 = vmatpush.bf16.msra.mxu0 %v1143_v3  ;;  %1242 = vmatpush.bf16.msra.mxu2 %v1143_v3  ;;  %v1001_v14 = vor.u32 %v1123_v11, %v998_v13  ;;  %v934_v19 = vld [vmem:[%s1323_s5 + $0x18] sm:$0xf0]  ;;  %v1006_v21 = vld [vmem:[%s1323_s5 + $0xa8] sm:$0xf0]  ;;  %v1137_v23 = vld [vmem:[%s1526_s1] sm:$0xff] }
  0x11   : > { %605 = vmatpush.bf16.msra.mxu1 %v508_v5  ;;  %1249 = vmatpush.bf16.msra.mxu3 %v508_v5  ;;  %v937_v22 = vor.u32 %v1107_v18, %v934_v19  ;;  %v924_v24 = vld [vmem:[%s1323_s5] sm:$0xf]  ;;  %v1106_v25 = vld [vmem:[%s1323_s5 + $0x4] sm:$0xf0]  ;;  %v1009_v26 = vor.u32 %v1125_v20, %v1006_v21  ;;  %v1109_v31 = vld [vmem:[%s1323_s5 + $0x24] sm:$0xf] }
  0x12   : > { %v988_v27 = vld [vmem:[%s1323_s5 + $0x80] sm:$0xf]  ;;  %v1122_v28 = vld [vmem:[%s1323_s5 + $0x84] sm:$0xf0]  ;;  %v925_v29 = vor.u32 %v1106_v25, %v924_v24  ;;  %v942_v32 = vld [vmem:[%s1323_s5 + $0x28] sm:$0xf0] }
  0x13   : > { %v989_v30 = vor.u32 %v1122_v28, %v988_v27  ;;  %v1127_v33 = vld [vmem:[%s1323_s5 + $0xb4] sm:$0xf]  ;;  %v1014_v34 = vld [vmem:[%s1323_s5 + $0xb8] sm:$0xf0]  ;;  %v945_v35 = vor.u32 %v1109_v31, %v942_v32  ;;  %v932_v36 = vld [vmem:[%s1323_s5 + $0x10] sm:$0xf] }
  0x14   : > { %512 = vmatpush.bf16.msra.mxu0 %v1142_v7  ;;  %1243 = vmatpush.bf16.msra.mxu2 %v1142_v7  ;;  %v1108_v37 = vld [vmem:[%s1323_s5 + $0x14] sm:$0xf0]  ;;  %v1017_v38 = vor.u32 %v1127_v33, %v1014_v34  ;;  %v996_v39 = vld [vmem:[%s1323_s5 + $0x90] sm:$0xf]  ;;  %v1111_v43 = vld [vmem:[%s1323_s5 + $0x34] sm:$0xf] }
  0x15   : > { %606 = vmatpush.bf16.msra.mxu1 %v1145_v6  ;;  %1250 = vmatpush.bf16.msra.mxu3 %v1145_v6  ;;  %v1124_v40 = vld [vmem:[%s1323_s5 + $0x94] sm:$0xf0]  ;;  %v933_v41 = vor.u32 %v1108_v37, %v932_v36  ;;  %v950_v44 = vld [vmem:[%s1323_s5 + $0x38] sm:$0xf0]  ;;  %v1129_v45 = vld [vmem:[%s1323_s5 + $0xc4] sm:$0xf] }
  0x16   : > { %v997_v42 = vor.u32 %v1124_v40, %v996_v39  ;;  %v1022_v46 = vld [vmem:[%s1323_s5 + $0xc8] sm:$0xf0]  ;;  %v953_v47 = vor.u32 %v1111_v43, %v950_v44  ;;  %v940_v48 = vld [vmem:[%s1323_s5 + $0x20] sm:$0xf]  ;;  %v1110_v49 = vld [vmem:[%s1323_s5 + $0x24] sm:$0xf0] }
  0x17   : > { %v1025_v50 = vor.u32 %v1129_v45, %v1022_v46  ;;  %v1004_v51 = vld [vmem:[%s1323_s5 + $0xa0] sm:$0xf]  ;;  %v1126_v52 = vld [vmem:[%s1323_s5 + $0xa4] sm:$0xf0]  ;;  %v941_v53 = vor.u32 %v1110_v49, %v940_v48  ;;  %v1113_v55 = vld [vmem:[%s1323_s5 + $0x44] sm:$0xf] }
  0x18   : > { %1086 = vmatmul.msk.bf16.vlgmr.msra.gmra.mxu1 %vm457_vm1, %v929_v10  ;;  %513 = vmatpush.bf16.msra.mxu0 %v1141_v12  ;;  %v1005_v54 = vor.u32 %v1126_v52, %v1004_v51  ;;  %v958_v56 = vld [vmem:[%s1323_s5 + $0x48] sm:$0xf0]  ;;  %v1131_v57 = vld [vmem:[%s1323_s5 + $0xd4] sm:$0xf]  ;;  %v1030_v58 = vld [vmem:[%s1323_s5 + $0xd8] sm:$0xf0] }
  0x19   : > { %1095 = vmatmul.msk.bf16.vlgmr.msra.gmra.mxu3 %vm457_vm1, %v1001_v14  ;;  %1244 = vmatpush.bf16.msra.mxu2 %v1141_v12  ;;  %v961_v59 = vor.u32 %v1113_v55, %v958_v56  ;;  %v948_v60 = vld [vmem:[%s1323_s5 + $0x30] sm:$0xf]  ;;  %v1112_v61 = vld [vmem:[%s1323_s5 + $0x34] sm:$0xf0]  ;;  %v1033_v62 = vor.u32 %v1131_v57, %v1030_v58  ;;  %v1115_v3 = vld [vmem:[%s1323_s5 + $0x54] sm:$0xf] }
  0x1a   : > { %v1012_v63 = vld [vmem:[%s1323_s5 + $0xb0] sm:$0xf]  ;;  %v1128_v0 = vld [vmem:[%s1323_s5 + $0xb4] sm:$0xf0]  ;;  %v949_v1 = vor.u32 %v1112_v61, %v948_v60  ;;  %v966_v4 = vld [vmem:[%s1323_s5 + $0x58] sm:$0xf0] }
  0x1b   : > { %v1013_v2 = vor.u32 %v1128_v0, %v1012_v63  ;;  %v1133_v5 = vld [vmem:[%s1323_s5 + $0xe4] sm:$0xf]  ;;  %v1038_v6 = vld [vmem:[%s1323_s5 + $0xe8] sm:$0xf0]  ;;  %v969_v7 = vor.u32 %v1115_v3, %v966_v4  ;;  %v956_v8 = vld [vmem:[%s1323_s5 + $0x40] sm:$0xf] }
  0x1c   : > { %514 = vmatpush.bf16.msra.mxu0 %v1140_v15  ;;  %v1114_v9 = vld [vmem:[%s1323_s5 + $0x44] sm:$0xf0]  ;;  %v1041_v10 = vor.u32 %v1133_v5, %v1038_v6  ;;  %v1020_v11 = vld [vmem:[%s1323_s5 + $0xc0] sm:$0xf]  ;;  %v1046_v18 = vld [vmem:[%s1323_s5 + $0xf8] sm:$0xf0] }
  0x1d   : > { %1245 = vmatpush.bf16.msra.mxu2 %v1140_v15  ;;  %v1130_v12 = vld [vmem:[%s1323_s5 + $0xc4] sm:$0xf0]  ;;  %v957_v13 = vor.u32 %v1114_v9, %v956_v8  ;;  %v1117_v15 = vld [vmem:[%s1323_s5 + $0x64] sm:$0xf]  ;;  %v964_v20 = vld [vmem:[%s1323_s5 + $0x50] sm:$0xf] }
  0x1e   : > { %v1021_v14 = vor.u32 %v1130_v12, %v1020_v11  ;;  %v1116_v21 = vld [vmem:[%s1323_s5 + $0x54] sm:$0xf0]  ;;  %v1119_v27 = vld [vmem:[%s1323_s5 + $0x74] sm:$0xf]  ;;  %v982_v28 = vld [vmem:[%s1323_s5 + $0x78] sm:$0xf0] }
  0x1f   : > { %v1132_v24 = vld [vmem:[%s1323_s5 + $0xd4] sm:$0xf0]  ;;  %v965_v25 = vor.u32 %v1116_v21, %v964_v20  ;;  %v1118_v31 = vld [vmem:[%s1323_s5 + $0x64] sm:$0xf0]  ;;  %v1036_v32 = vld [vmem:[%s1323_s5 + $0xe0] sm:$0xf] }
  0x20   : > { %515 = vmatpush.bf16.msra.mxu0 %v1139_v16  ;;  %v1134_v33 = vld [vmem:[%s1323_s5 + $0xe4] sm:$0xf0]  ;;  %v1121_v36 = vld [vmem:[%s1323_s5 + $0x84] sm:$0xf]  ;;  %v990_v37 = vld [vmem:[%s1323_s5 + $0x88] sm:$0xf0] }
  0x21   : > { %1246 = vmatpush.bf16.msra.mxu2 %v1139_v16  ;;  %v974_v16 = vld [vmem:[%s1323_s5 + $0x68] sm:$0xf0]  ;;  %v980_v40 = vld [vmem:[%s1323_s5 + $0x70] sm:$0xf]  ;;  %v1136_v43 = vld [vmem:[%s1323_s5 + $0xf4] sm:$0xf0] }
  0x22   : > { %v977_v19 = vor.u32 %v1117_v15, %v974_v16  ;;  %v1423_v51 = vld [vmem:[%s1527_s2] ss:$0 sm:$0xff] }
  0x24   : > { %516 = vmatpush.bf16.msra.mxu0 %v1138_v17 }
  0x25   : > { %1247 = vmatpush.bf16.msra.mxu2 %v1138_v17  ;;  %v1135_v17 = vld [vmem:[%s1323_s5 + $0xf4] sm:$0xf] }
  0x28   : > { %1087 = vmatmul.msk.bf16.gmra.mxu1 %vm457_vm1, %v937_v22  ;;  %517 = vmatpush.bf16.msra.mxu0 %v1137_v23  ;;  %v1049_v22 = vor.u32 %v1135_v17, %v1046_v18 }
  0x29   : > { %1096 = vmatmul.msk.bf16.gmra.mxu3 %vm457_vm1, %v1009_v26  ;;  %1248 = vmatpush.bf16.msra.mxu2 %v1137_v23  ;;  %v1028_v23 = vld [vmem:[%s1323_s5 + $0xd0] sm:$0xf] }
  0x2a   : > { %v1029_v26 = vor.u32 %v1132_v24, %v1028_v23 }
  0x2b   : > { %518 = vmatmul.bf16.vlgmr.msra.gmra.mxu0 %v925_v29  ;;  %v985_v29 = vor.u32 %v1119_v27, %v982_v28 }
  0x2c   : > { %558 = vmatmul.bf16.vlgmr.msra.gmra.mxu2 %v989_v30  ;;  %v972_v30 = vld [vmem:[%s1323_s5 + $0x60] sm:$0xf] }
  0x2d   : > { %v973_v34 = vor.u32 %v1118_v31, %v972_v30 }
  0x38   : > { %1088 = vmatmul.msk.bf16.gmra.mxu1 %vm457_vm1, %v945_v35  ;;  %v1037_v35 = vor.u32 %v1134_v33, %v1036_v32 }
  0x39   : > { %1097 = vmatmul.msk.bf16.gmra.mxu3 %vm457_vm1, %v1017_v38  ;;  %v993_v38 = vor.u32 %v1121_v36, %v990_v37 }
  0x3b   : > { %523 = vmatmul.bf16.gmra.mxu0 %v933_v41  ;;  %v1120_v41 = vld [vmem:[%s1323_s5 + $0x74] sm:$0xf0] }
  0x3c   : > { %563 = vmatmul.bf16.gmra.mxu2 %v997_v42  ;;  %v1044_v42 = vld [vmem:[%s1323_s5 + $0xf0] sm:$0xf]  ;;  %v981_v44 = vor.u32 %v1120_v41, %v980_v40 }
  0x3d   : > { %v1045_v45 = vor.u32 %v1136_v43, %v1044_v42 }
  0x48   : > { %1089 = vmatmul.msk.bf16.gmra.mxu1 %vm457_vm1, %v953_v47 }
  0x49   : > { %1098 = vmatmul.msk.bf16.gmra.mxu3 %vm457_vm1, %v1025_v50 }
  0x4b   : > { %528 = vmatmul.bf16.gmra.mxu0 %v941_v53 }
  0x4c   : > { %568 = vmatmul.bf16.gmra.mxu2 %v1005_v54  ;;  %v1429_v54 = vld [vmem:[%s1528_s3] ss:$0 sm:$0xff] }
  0x58   : > { %1090 = vmatmul.msk.bf16.gmra.mxu1 %vm457_vm1, %v961_v59 }
  0x59   : > { %1099 = vmatmul.msk.bf16.gmra.mxu3 %vm457_vm1, %v1033_v62 }
  0x5b   : > { %533 = vmatmul.bf16.gmra.mxu0 %v949_v1 }
  0x5c   : > { %573 = vmatmul.bf16.gmra.mxu2 %v1013_v2 }
  0x68   : > { %1091 = vmatmul.msk.bf16.gmra.mxu1 %vm457_vm1, %v969_v7 }
  0x69   : > { %1100 = vmatmul.msk.bf16.gmra.mxu3 %vm457_vm1, %v1041_v10 }
  0x6b   : > { %538 = vmatmul.bf16.gmra.mxu0 %v957_v13 }
  0x6c   : > { %578 = vmatmul.bf16.gmra.mxu2 %v1021_v14 }
  0x78   : > { %1092 = vmatmul.msk.bf16.gmra.mxu1 %vm457_vm1, %v977_v19 }
  0x79   : > { %1101 = vmatmul.msk.bf16.gmra.mxu3 %vm457_vm1, %v1049_v22 }
  0x7b   : > { %543 = vmatmul.bf16.gmra.mxu0 %v965_v25 }
  0x7c   : > { %583 = vmatmul.bf16.gmra.mxu2 %v1029_v26 }
  0x88   : > { %1093 = vmatmul.msk.bf16.gmra.mxu1 %vm457_vm1, %v985_v29 }
  0x8b   : > { %548 = vmatmul.bf16.gmra.mxu0 %v973_v34 }
  0x8c   : > { %588 = vmatmul.bf16.gmra.mxu2 %v1037_v35 }
  0x95   : > { %v608_v39 = vpop.f32.mrf.mxu1 }
  0x98   : > { %1094 = vmatmul.msk.bf16.gmra.mxu1 %vm457_vm1, %v993_v38 }
  0x9b   : > { %553 = vmatmul.bf16.gmra.mxu0 %v981_v44 }
  0x9c   : > { %593 = vmatmul.bf16.gmra.mxu2 %v1045_v45  ;;  %v653_v48 = vpop.f32.mrf.mxu3 }
  0x9d   : > { %v610_v46 = vpop.f32.mrf.mxu1 }
  0xa4   : > { %v655_v56 = vpop.f32.mrf.mxu3 }
  0xa5   : > { %v613_v47 = vpop.f32.mrf.mxu1 }
  0xa8   : > { %v519_v49 = vpop.f32.mrf.mxu0 }
  0xa9   : > { %v609_v50 = vadd.f32 %v608_v39, %v519_v49 }
  0xab   : > { %v692_v53 = vmul.f32 %v1423_v51, %v609_v50 }
  0xac   : > { %v658_v4 = vpop.f32.mrf.mxu3 }
  0xad   : > { %v615_v52 = vpop.f32.mrf.mxu1  ;;  %v728_v59 = vadd.f32 %v1429_v54, %v692_v53 }
  0xaf   : > { %v1431_v55 = vpop.f32.mrf.mxu2  ;;  %v760_v63 = vmax.f32 %v728_v59, 0.0 }
  0xb0   : > { %v521_v57 = vpop.f32.mrf.mxu0 }
  0xb1   : > { %v611_v58 = vadd.f32 %v610_v46, %v521_v57 }
  0xb3   : > { %v693_v60 = vmul.f32 %v1423_v51, %v611_v58 }
  0xb4   : > { %v660_v14 = vpop.f32.mrf.mxu3 }
  0xb5   : > { %v618_v61 = vpop.f32.mrf.mxu1  ;;  %v729_v62 = vadd.f32 %v1429_v54, %v693_v60 }
  0xb7   : > { %v761_v0 = vmax.f32 %v729_v62, 0.0  ;;  %v1437_v1 = vpop.f32.mrf.mxu2 }
  0xb8   : > { %v524_v2 = vpop.f32.mrf.mxu0 }
  0xb9   : > { %v1149_v3 = vpack.c.bf16 %v761_v0, %v760_v63  ;;  %v614_v5 = vadd.f32 %v613_v47, %v524_v2 }
  0xbb   : > { %1150 = vst [vmem:[%s1442_s25] sm:$0xff] %v1149_v3   ;;  %v694_v7 = vmul.f32 %v1423_v51, %v614_v5 }
  0xbc   : > { %v663_v29 = vpop.f32.mrf.mxu3 }
  0xbd   : > { %v620_v6 = vpop.f32.mrf.mxu1  ;;  %v730_v12 = vadd.f32 %v1429_v54, %v694_v7 }
  0xbf   : > { %v564_v8 = vpop.f32.mrf.mxu2  ;;  %v762_v18 = vmax.f32 %v730_v12, 0.0 }
  0xc0   : > { %v526_v9 = vpop.f32.mrf.mxu0  ;;  %v654_v11 = vadd.f32 %v653_v48, %v564_v8 }
  0xc1   : > { %v616_v10 = vadd.f32 %v615_v52, %v526_v9 }
  0xc2   : > { %v710_v17 = vmul.f32 %v1423_v51, %v654_v11 }
  0xc3   : > { %v695_v13 = vmul.f32 %v1423_v51, %v616_v10 }
  0xc4   : > { %v746_v24 = vadd.f32 %v1429_v54, %v710_v17  ;;  %v665_v46 = vpop.f32.mrf.mxu3 }
  0xc5   : > { %v623_v15 = vpop.f32.mrf.mxu1  ;;  %v731_v16 = vadd.f32 %v1429_v54, %v695_v13 }
  0xc6   : > { %v778_v30 = vmax.f32 %v746_v24, 0.0 }
  0xc7   : > { %v763_v19 = vmax.f32 %v731_v16, 0.0  ;;  %v566_v20 = vpop.f32.mrf.mxu2 }
  0xc8   : > { %v656_v21 = vadd.f32 %v655_v56, %v566_v20  ;;  %v529_v22 = vpop.f32.mrf.mxu0 }
  0xc9   : > { %v1154_v23 = vpack.c.bf16 %v763_v19, %v762_v18  ;;  %v619_v26 = vadd.f32 %v618_v61, %v529_v22 }
  0xca   : > { %v711_v25 = vmul.f32 %v1423_v51, %v656_v21 }
  0xcb   : > { %1226 = vst [vmem:[%s1442_s25 + $0x8] sm:$0xff] %v1154_v23   ;;  %v696_v32 = vmul.f32 %v1423_v51, %v619_v26 }
  0xcc   : > { %v747_v27 = vadd.f32 %v1429_v54, %v711_v25  ;;  %v668_v2 = vpop.f32.mrf.mxu3 }
  0xcd   : > { %v625_v28 = vpop.f32.mrf.mxu1  ;;  %v732_v38 = vadd.f32 %v1429_v54, %v696_v32 }
  0xce   : > { %v779_v31 = vmax.f32 %v747_v27, 0.0 }
  0xcf   : > { %v569_v33 = vpop.f32.mrf.mxu2  ;;  %v764_v43 = vmax.f32 %v732_v38, 0.0 }
  0xd0   : > { %v1194_v34 = vpack.c.bf16 %v779_v31, %v778_v30  ;;  %v531_v35 = vpop.f32.mrf.mxu0  ;;  %v659_v37 = vadd.f32 %v658_v4, %v569_v33 }
  0xd1   : > { %v621_v36 = vadd.f32 %v620_v6, %v531_v35 }
  0xd2   : > { %1234 = vst [vmem:[%s1442_s25 + $0x48] sm:$0xff] %v1194_v34   ;;  %v712_v42 = vmul.f32 %v1423_v51, %v659_v37 }
  0xd3   : > { %v697_v39 = vmul.f32 %v1423_v51, %v621_v36 }
  0xd4   : > { %v748_v50 = vadd.f32 %v1429_v54, %v712_v42  ;;  %v670_v18 = vpop.f32.mrf.mxu3 }
  0xd5   : > { %v628_v40 = vpop.f32.mrf.mxu1  ;;  %v733_v41 = vadd.f32 %v1429_v54, %v697_v39 }
  0xd6   : > { %v780_v58 = vmax.f32 %v748_v50, 0.0 }
  0xd7   : > { %v765_v44 = vmax.f32 %v733_v41, 0.0  ;;  %v571_v45 = vpop.f32.mrf.mxu2 }
  0xd8   : > { %v661_v47 = vadd.f32 %v660_v14, %v571_v45  ;;  %v534_v48 = vpop.f32.mrf.mxu0 }
  0xd9   : > { %v1159_v49 = vpack.c.bf16 %v765_v44, %v764_v43  ;;  %v624_v53 = vadd.f32 %v623_v15, %v534_v48 }
  0xda   : > { %v713_v52 = vmul.f32 %v1423_v51, %v661_v47 }
  0xdb   : > { %1227 = vst [vmem:[%s1442_s25 + $0x10] sm:$0xff] %v1159_v49   ;;  %v698_v60 = vmul.f32 %v1423_v51, %v624_v53 }
  0xdc   : > { %v749_v56 = vadd.f32 %v1429_v54, %v713_v52  ;;  %v673_v33 = vpop.f32.mrf.mxu3 }
  0xdd   : > { %v630_v57 = vpop.f32.mrf.mxu1  ;;  %v734_v4 = vadd.f32 %v1429_v54, %v698_v60 }
  0xde   : > { %v781_v59 = vmax.f32 %v749_v56, 0.0 }
  0xdf   : > { %v574_v61 = vpop.f32.mrf.mxu2  ;;  %v766_v9 = vmax.f32 %v734_v4, 0.0 }
  0xe0   : > { %v1199_v62 = vpack.c.bf16 %v781_v59, %v780_v58  ;;  %v536_v63 = vpop.f32.mrf.mxu0  ;;  %v664_v3 = vadd.f32 %v663_v29, %v574_v61 }
  0xe1   : > { %v626_v0 = vadd.f32 %v625_v28, %v536_v63 }
  0xe2   : > { %1235 = vst [vmem:[%s1442_s25 + $0x50] sm:$0xff] %v1199_v62   ;;  %v714_v8 = vmul.f32 %v1423_v51, %v664_v3 }
  0xe3   : > { %v699_v5 = vmul.f32 %v1423_v51, %v626_v0 }
  0xe4   : > { %v750_v15 = vadd.f32 %v1429_v54, %v714_v8  ;;  %v675_v50 = vpop.f32.mrf.mxu3 }
  0xe5   : > { %v633_v6 = vpop.f32.mrf.mxu1  ;;  %v735_v7 = vadd.f32 %v1429_v54, %v699_v5 }
  0xe6   : > { %v782_v21 = vmax.f32 %v750_v15, 0.0 }
  0xe7   : > { %v767_v10 = vmax.f32 %v735_v7, 0.0  ;;  %v576_v11 = vpop.f32.mrf.mxu2 }
  0xe8   : > { %v666_v12 = vadd.f32 %v665_v46, %v576_v11  ;;  %v539_v13 = vpop.f32.mrf.mxu0 }
  0xe9   : > { %v1164_v14 = vpack.c.bf16 %v767_v10, %v766_v9  ;;  %v629_v17 = vadd.f32 %v628_v40, %v539_v13 }
  0xea   : > { %v715_v16 = vmul.f32 %v1423_v51, %v666_v12 }
  0xeb   : > { %1228 = vst [vmem:[%s1442_s25 + $0x18] sm:$0xff] %v1164_v14   ;;  %v700_v23 = vmul.f32 %v1423_v51, %v629_v17 }
  0xec   : > { %v751_v19 = vadd.f32 %v1429_v54, %v715_v16 }
  0xed   : > { %v635_v20 = vpop.f32.mrf.mxu1  ;;  %v736_v29 = vadd.f32 %v1429_v54, %v700_v23 }
  0xee   : > { %v783_v22 = vmax.f32 %v751_v19, 0.0 }
  0xef   : > { %v579_v24 = vpop.f32.mrf.mxu2  ;;  %v768_v35 = vmax.f32 %v736_v29, 0.0 }
  0xf0   : > { %v1204_v25 = vpack.c.bf16 %v783_v22, %v782_v21  ;;  %v541_v26 = vpop.f32.mrf.mxu0  ;;  %v669_v28 = vadd.f32 %v668_v2, %v579_v24 }
  0xf1   : > { %v631_v27 = vadd.f32 %v630_v57, %v541_v26 }
  0xf2   : > { %1236 = vst [vmem:[%s1442_s25 + $0x58] sm:$0xff] %v1204_v25   ;;  %v716_v34 = vmul.f32 %v1423_v51, %v669_v28 }
  0xf3   : > { %v701_v30 = vmul.f32 %v1423_v51, %v631_v27 }
  0xf4   : > { %v752_v41 = vadd.f32 %v1429_v54, %v716_v34 }
  0xf5   : > { %v638_v31 = vpop.f32.mrf.mxu1  ;;  %v737_v32 = vadd.f32 %v1429_v54, %v701_v30 }
  0xf6   : > { %v784_v46 = vmax.f32 %v752_v41, 0.0 }
  0xf7   : > { %v769_v36 = vmax.f32 %v737_v32, 0.0  ;;  %v581_v37 = vpop.f32.mrf.mxu2 }
  0xf8   : > { %v671_v38 = vadd.f32 %v670_v18, %v581_v37  ;;  %v544_v39 = vpop.f32.mrf.mxu0 }
  0xf9   : > { %v1169_v40 = vpack.c.bf16 %v769_v36, %v768_v35  ;;  %v634_v43 = vadd.f32 %v633_v6, %v544_v39  ;;  %v678_v6 = vpop.f32.mrf.mxu3 }
  0xfa   : > { %v717_v42 = vmul.f32 %v1423_v51, %v671_v38 }
  0xfb   : > { %1229 = vst [vmem:[%s1442_s25 + $0x20] sm:$0xff] %v1169_v40   ;;  %v702_v48 = vmul.f32 %v1423_v51, %v634_v43 }
  0xfc   : > { %v753_v44 = vadd.f32 %v1429_v54, %v717_v42 }
  0xfd   : > { %v640_v45 = vpop.f32.mrf.mxu1  ;;  %v738_v58 = vadd.f32 %v1429_v54, %v702_v48 }
  0xfe   : > { %v785_v47 = vmax.f32 %v753_v44, 0.0 }
  0xff   : > { %v584_v49 = vpop.f32.mrf.mxu2  ;;  %v770_v63 = vmax.f32 %v738_v58, 0.0 }
 0x100   : > { %v1209_v52 = vpack.c.bf16 %v785_v47, %v784_v46  ;;  %v546_v53 = vpop.f32.mrf.mxu0  ;;  %v674_v57 = vadd.f32 %v673_v33, %v584_v49 }
 0x101   : > { %v636_v56 = vadd.f32 %v635_v20, %v546_v53  ;;  %v680_v21 = vpop.f32.mrf.mxu3 }
 0x102   : > { %1237 = vst [vmem:[%s1442_s25 + $0x60] sm:$0xff] %v1209_v52   ;;  %v718_v62 = vmul.f32 %v1423_v51, %v674_v57 }
 0x103   : > { %v703_v59 = vmul.f32 %v1423_v51, %v636_v56 }
 0x104   : > { %v754_v7 = vadd.f32 %v1429_v54, %v718_v62 }
 0x105   : > { %v643_v60 = vpop.f32.mrf.mxu1  ;;  %v739_v61 = vadd.f32 %v1429_v54, %v703_v59 }
 0x106   : > { %v786_v12 = vmax.f32 %v754_v7, 0.0 }
 0x107   : > { %v771_v0 = vmax.f32 %v739_v61, 0.0  ;;  %v586_v2 = vpop.f32.mrf.mxu2 }
 0x108   : > { %v676_v3 = vadd.f32 %v675_v50, %v586_v2  ;;  %v549_v4 = vpop.f32.mrf.mxu0 }
 0x109   : > { %v1174_v5 = vpack.c.bf16 %v771_v0, %v770_v63  ;;  %v639_v9 = vadd.f32 %v638_v31, %v549_v4  ;;  %v683_v39 = vpop.f32.mrf.mxu3 }
 0x10a   : > { %v719_v8 = vmul.f32 %v1423_v51, %v676_v3 }
 0x10b   : > { %1230 = vst [vmem:[%s1442_s25 + $0x28] sm:$0xff] %v1174_v5   ;;  %v704_v14 = vmul.f32 %v1423_v51, %v639_v9 }
 0x10c   : > { %v755_v10 = vadd.f32 %v1429_v54, %v719_v8 }
 0x10d   : > { %v645_v11 = vpop.f32.mrf.mxu1  ;;  %v740_v20 = vadd.f32 %v1429_v54, %v704_v14 }
 0x10e   : > { %v787_v13 = vmax.f32 %v755_v10, 0.0 }
 0x10f   : > { %v589_v15 = vpop.f32.mrf.mxu2  ;;  %v772_v26 = vmax.f32 %v740_v20, 0.0 }
 0x110   : > { %v1214_v16 = vpack.c.bf16 %v787_v13, %v786_v12  ;;  %v551_v17 = vpop.f32.mrf.mxu0  ;;  %v679_v19 = vadd.f32 %v678_v6, %v589_v15 }
 0x111   : > { %v641_v18 = vadd.f32 %v640_v45, %v551_v17  ;;  %v685_v61 = vpop.f32.mrf.mxu3 }
 0x112   : > { %1238 = vst [vmem:[%s1442_s25 + $0x68] sm:$0xff] %v1214_v16   ;;  %v720_v25 = vmul.f32 %v1423_v51, %v679_v19 }
 0x113   : > { %v705_v22 = vmul.f32 %v1423_v51, %v641_v18 }
 0x114   : > { %v756_v33 = vadd.f32 %v1429_v54, %v720_v25 }
 0x115   : > { %v648_v23 = vpop.f32.mrf.mxu1  ;;  %v741_v24 = vadd.f32 %v1429_v54, %v705_v22 }
 0x116   : > { %v649_v28 = vadd.f32 %v648_v23, %v1431_v55  ;;  %v788_v55 = vmax.f32 %v756_v33, 0.0 }
 0x117   : > { %v773_v27 = vmax.f32 %v741_v24, 0.0  ;;  %v591_v29 = vpop.f32.mrf.mxu2 }
 0x118   : > { %v681_v30 = vadd.f32 %v680_v21, %v591_v29  ;;  %v554_v31 = vpop.f32.mrf.mxu0  ;;  %v708_v35 = vmul.f32 %v1423_v51, %v649_v28 }
 0x119   : > { %v1179_v32 = vpack.c.bf16 %v773_v27, %v772_v26  ;;  %v644_v36 = vadd.f32 %v643_v60, %v554_v31 }
 0x11a   : > { %v721_v34 = vmul.f32 %v1423_v51, %v681_v30  ;;  %v744_v42 = vadd.f32 %v1429_v54, %v708_v35 }
 0x11b   : > { %1231 = vst [vmem:[%s1442_s25 + $0x30] sm:$0xff] %v1179_v32   ;;  %v706_v43 = vmul.f32 %v1423_v51, %v644_v36 }
 0x11c   : > { %v757_v37 = vadd.f32 %v1429_v54, %v721_v34  ;;  %v776_v52 = vmax.f32 %v744_v42, 0.0 }
 0x11d   : > { %v650_v38 = vpop.f32.mrf.mxu1 }
 0x11e   : > { %v651_v40 = vadd.f32 %v650_v38, %v1437_v1  ;;  %v789_v41 = vmax.f32 %v757_v37, 0.0  ;;  %v742_v1 = vadd.f32 %v1429_v54, %v706_v43 }
 0x11f   : > { %v594_v45 = vpop.f32.mrf.mxu2 }
 0x120   : > { %v709_v44 = vmul.f32 %v1423_v51, %v651_v40  ;;  %v1219_v46 = vpack.c.bf16 %v789_v41, %v788_v55  ;;  %v556_v47 = vpop.f32.mrf.mxu0  ;;  %v684_v50 = vadd.f32 %v683_v39, %v594_v45  ;;  %v774_v60 = vmax.f32 %v742_v1, 0.0 }
 0x121   : > { %v646_v49 = vadd.f32 %v645_v11, %v556_v47 }
 0x122   : > { %v745_v48 = vadd.f32 %v1429_v54, %v709_v44  ;;  %1239 = vst [vmem:[%s1442_s25 + $0x70] sm:$0xff] %v1219_v46   ;;  %v722_v59 = vmul.f32 %v1423_v51, %v684_v50 }
 0x123   : > { %v707_v56 = vmul.f32 %v1423_v51, %v646_v49 }
 0x124   : > { %v777_v53 = vmax.f32 %v745_v48, 0.0  ;;  %v758_v3 = vadd.f32 %v1429_v54, %v722_v59 }
 0x125   : > { %v743_v58 = vadd.f32 %v1429_v54, %v707_v56 }
 0x126   : > { %v1189_v57 = vpack.c.bf16 %v777_v53, %v776_v52  ;;  %v790_v6 = vmax.f32 %v758_v3, 0.0 }
 0x127   : > { %v775_v62 = vmax.f32 %v743_v58, 0.0  ;;  %v596_v63 = vpop.f32.mrf.mxu2 }
 0x128   : > { %1233 = vst [vmem:[%s1442_s25 + $0x40] sm:$0xff] %v1189_v57   ;;  %v686_v0 = vadd.f32 %v685_v61, %v596_v63 }
 0x129   : > { %v1184_v2 = vpack.c.bf16 %v775_v62, %v774_v60 }
 0x12a   : > { %v723_v4 = vmul.f32 %v1423_v51, %v686_v0 }
 0x12b   : > { %1232 = vst [vmem:[%s1442_s25 + $0x38] sm:$0xff] %v1184_v2  }
 0x12c   : > { %v759_v5 = vadd.f32 %v1429_v54, %v723_v4 }
 0x12e   : > { %v791_v7 = vmax.f32 %v759_v5, 0.0 }
 0x130   : > { %v1224_v8 = vpack.c.bf16 %v791_v7, %v790_v6 }
 0x132   : > { %1240 = vst [vmem:[%s1442_s25 + $0x78] sm:$0xff] %v1224_v8  }
 0x133 PF: > { %s14_s15 = sadd.s32 1, %s1267_s15  }
 0x134   : > { %p11_p4 = scmp.ge.s32.totalorder %s14_s15, 4  }
 0x136   :  { %13 = sbr.rel (!%p11_p4) target bundleno = 1 (0x1), region = 66 }

// kernel: encoder_cnn_forward.11
= control target key start
LH: loop header
LB: loop body
LE: loop exit
PB: predicated region body
PF: predicated region fallthrough
CT: control target
= control target key end

     0   :  { %s552_s15 = smov 0   ;;  %s597_s0 = inlined_call_operand.vmem [shape: bf16[128,72], index: 0, kind: input, shape index: {}]   ;;  %s598_s1 = inlined_call_operand.vmem [shape: bf16[72,128], index: 1, kind: input, shape index: {}]   ;;  %s599_s2 = inlined_call_operand.vmem [shape: f32[1,128], index: 2, kind: input, shape index: {}]   ;;  %s600_s3 = inlined_call_operand.vmem [shape: f32[1,128], index: 3, kind: input, shape index: {}]   ;;  %s601_s4 = inlined_call_operand.vmem [shape: bf16[128,128], index: 4, kind: output, shape index: {}]  }
   0x1 LB: > { %s416_s16 = sadd.s32 4294967295, %s525_s15   ;;  %p420_p0 = scmp.ge.s32.totalorder %s525_s15, 1  ;;  %s525_s15 = sphi %s552_s15, %s14_s15  }
   0x2   : > { %p163_p1 = scmp.lt.s32.totalorder %s525_s15, 3 }
   0x4   : > { %p164_p2 = pnand %p420_p0, %p163_p1 }
   0x5   : > { %s421_s19 = sshll.u32 (!%p164_p2), %s416_s16, 3 }
   0x6   : > { %167 = sbr.rel (%p164_p2) target bundleno = 187 (0xbb), region = 36  ;;  %p190_p3 = scmp.lt.s32.totalorder (!%p164_p2), %s421_s19, 15 }
   0xb   : > { %v218_v0 = vld [vmem:[%s598_s1 + $0x20] sm:$0xf]  ;;  %vm279_vm0 = vcmask 1043456   ;;  %v470_v4 = vld [vmem:[%s598_s1 + $0x18] sm:$0xff]  ;;  %v469_v5 = vld [vmem:[%s598_s1 + $0x10] sm:$0xff]  ;;  %s603_s19 = smov (!%p190_p3, %s421_s19), 15 }
   0xc   : > { %v256_v1 = vunpack.c.l.b16 %v218_v0  ;;  %v468_v6 = vld [vmem:[%s598_s1 + $0x8] sm:$0xff]  ;;  %s422_s26 = sshll.u32 %s603_s19, 2  ;;  %v467_v7 = vld [vmem:[%s598_s1] sm:$0xff]  ;;  %vm266_vm1 = vcmask 588800  }
   0xd   : > { %s193_s5 = scalar_lea.vmem %s597_s0, %s422_s26  ;;  %v517_v14 = vld [vmem:[%s599_s2] ss:$0 sm:$0xff]  ;;  %s199_s12 = scalar_lea.vmem %s601_s4, %s422_s26 }
   0xe   : > { %v261_v2 = vpack.c.b16 %v256_v1, %v256_v1  ;;  %v463_v8 = vld [vmem:[%s193_s5] sm:$0xff]  ;;  %v464_v9 = vld [vmem:[%s193_s5 + $0x8] sm:$0xff]  ;;  %v465_v10 = vld [vmem:[%s193_s5 + $0x10] sm:$0xff] }
   0xf   : > { %v466_v11 = vld [vmem:[%s193_s5 + $0x18] sm:$0xff]  ;;  %v518_v16 = vld [vmem:[%s600_s3] ss:$0 sm:$0xff] }
  0x10   : > { %v281_v3 = vsel %vm279_vm0, %v261_v2, 0 }
  0x11   : > { %286 = vmatpush.bf16.msra.mxu0 %v281_v3  ;;  %494 = vmatpush.bf16.msra.mxu1 %v281_v3 }
  0x12   : > { %495 = vmatpush.bf16.msra.mxu2 %v281_v3  ;;  %496 = vmatpush.bf16.msra.mxu3 %v281_v3 }
  0x15   : > { %287 = vmatpush.bf16.msra.mxu0 %v470_v4  ;;  %497 = vmatpush.bf16.msra.mxu1 %v470_v4 }
  0x16   : > { %498 = vmatpush.bf16.msra.mxu2 %v470_v4  ;;  %499 = vmatpush.bf16.msra.mxu3 %v470_v4 }
  0x19   : > { %288 = vmatpush.bf16.msra.mxu0 %v469_v5  ;;  %500 = vmatpush.bf16.msra.mxu1 %v469_v5 }
  0x1a   : > { %501 = vmatpush.bf16.msra.mxu2 %v469_v5  ;;  %502 = vmatpush.bf16.msra.mxu3 %v469_v5 }
  0x1d   : > { %289 = vmatpush.bf16.msra.mxu0 %v468_v6  ;;  %503 = vmatpush.bf16.msra.mxu1 %v468_v6 }
  0x1e   : > { %504 = vmatpush.bf16.msra.mxu2 %v468_v6  ;;  %505 = vmatpush.bf16.msra.mxu3 %v468_v6 }
  0x21   : > { %290 = vmatpush.bf16.msra.mxu0 %v467_v7  ;;  %506 = vmatpush.bf16.msra.mxu1 %v467_v7 }
  0x22   : > { %507 = vmatpush.bf16.msra.mxu2 %v467_v7  ;;  %508 = vmatpush.bf16.msra.mxu3 %v467_v7 }
  0x24   : > { %457 = vmatmul.msk.bf16.vlgmr.msra.gmra.mxu0 %vm266_vm1, %v463_v8  ;;  %458 = vmatmul.msk.bf16.vlgmr.msra.gmra.mxu1 %vm266_vm1, %v464_v9 }
  0x25   : > { %459 = vmatmul.msk.bf16.vlgmr.msra.gmra.mxu2 %vm266_vm1, %v465_v10  ;;  %460 = vmatmul.msk.bf16.vlgmr.msra.gmra.mxu3 %vm266_vm1, %v466_v11 }
  0xa1   : > { %v292_v12 = vpop.f32.mrf.mxu0  ;;  %v297_v13 = vpop.f32.mrf.mxu1 }
  0xa2   : > { %v316_v15 = vmul.f32 %v517_v14, %v292_v12  ;;  %v318_v17 = vmul.f32 %v517_v14, %v297_v13 }
  0xa4   : > { %v328_v22 = vadd.f32 %v518_v16, %v316_v15  ;;  %v330_v23 = vadd.f32 %v518_v16, %v318_v17 }
  0xa6   : > { %v336_v30 = vmax.f32 %v328_v22, 0.0  ;;  %v338_v31 = vmax.f32 %v330_v23, 0.0 }
  0xa8   : > { %v302_v18 = vpop.f32.mrf.mxu2  ;;  %v307_v19 = vpop.f32.mrf.mxu3 }
  0xa9   : > { %v294_v20 = vpop.f32.mrf.mxu0  ;;  %v299_v21 = vpop.f32.mrf.mxu1  ;;  %v320_v28 = vmul.f32 %v517_v14, %v302_v18  ;;  %v322_v29 = vmul.f32 %v517_v14, %v307_v19 }
  0xaa   : > { %v317_v24 = vmul.f32 %v517_v14, %v294_v20  ;;  %v319_v25 = vmul.f32 %v517_v14, %v299_v21 }
  0xab   : > { %v332_v38 = vadd.f32 %v518_v16, %v320_v28  ;;  %v334_v39 = vadd.f32 %v518_v16, %v322_v29 }
  0xac   : > { %v329_v26 = vadd.f32 %v518_v16, %v317_v24  ;;  %v331_v27 = vadd.f32 %v518_v16, %v319_v25 }
  0xad   : > { %v340_v44 = vmax.f32 %v332_v38, 0.0  ;;  %v342_v45 = vmax.f32 %v334_v39, 0.0 }
  0xae   : > { %v337_v32 = vmax.f32 %v329_v26, 0.0  ;;  %v339_v33 = vmax.f32 %v331_v27, 0.0 }
  0xb0   : > { %v474_v34 = vpack.c.bf16 %v337_v32, %v336_v30  ;;  %v479_v35 = vpack.c.bf16 %v339_v33, %v338_v31  ;;  %v304_v36 = vpop.f32.mrf.mxu2  ;;  %v309_v37 = vpop.f32.mrf.mxu3 }
  0xb1   : > { %v321_v40 = vmul.f32 %v517_v14, %v304_v36  ;;  %v323_v41 = vmul.f32 %v517_v14, %v309_v37 }
  0xb2   : > { %475 = vst [vmem:[%s199_s12] sm:$0xff] %v474_v34  }
  0xb3   : > { %491 = vst [vmem:[%s199_s12 + $0x8] sm:$0xff] %v479_v35   ;;  %v333_v42 = vadd.f32 %v518_v16, %v321_v40  ;;  %v335_v43 = vadd.f32 %v518_v16, %v323_v41 }
  0xb5   : > { %v341_v46 = vmax.f32 %v333_v42, 0.0  ;;  %v343_v47 = vmax.f32 %v335_v43, 0.0 }
  0xb7   : > { %v484_v48 = vpack.c.bf16 %v341_v46, %v340_v44  ;;  %v489_v49 = vpack.c.bf16 %v343_v47, %v342_v45 }
  0xb9   : > { %492 = vst [vmem:[%s199_s12 + $0x10] sm:$0xff] %v484_v48  }
  0xba   : > { %493 = vst [vmem:[%s199_s12 + $0x18] sm:$0xff] %v489_v49  }
  0xbb PF: > { %s14_s15 = sadd.s32 1, %s525_s15  }
  0xbc   : > { %p11_p4 = scmp.ge.s32.totalorder %s14_s15, 4  }
  0xbe   :  { %13 = sbr.rel (!%p11_p4) target bundleno = 1 (0x1), region = 66 }

// kernel: encoder_cnn_forward.12
= control target key start
LH: loop header
LB: loop body
LE: loop exit
PB: predicated region body
PF: predicated region fallthrough
CT: control target
= control target key end

     0   :  { %s583_s15 = smov 0   ;;  %s637_s0 = inlined_call_operand.vmem [shape: bf16[128,128], index: 0, kind: input, shape index: {}]   ;;  %s638_s1 = inlined_call_operand.vmem [shape: bf16[128,128], index: 1, kind: input, shape index: {}]   ;;  %s639_s2 = inlined_call_operand.vmem [shape: f32[1,128], index: 2, kind: input, shape index: {}]   ;;  %s640_s3 = inlined_call_operand.vmem [shape: f32[1,128], index: 3, kind: input, shape index: {}]   ;;  %s641_s4 = inlined_call_operand.vmem [shape: bf16[128,128], index: 4, kind: output, shape index: {}]  }
   0x1 LB: > { %s422_s16 = sadd.s32 4294967295, %s556_s15   ;;  %p426_p0 = scmp.ge.s32.totalorder %s556_s15, 1  ;;  %s556_s15 = sphi %s583_s15, %s14_s15  }
   0x2   : > { %p163_p1 = scmp.lt.s32.totalorder %s556_s15, 3 }
   0x4   : > { %p164_p2 = pnand %p426_p0, %p163_p1 }
   0x5   : > { %s427_s25 = sshll.u32 (!%p164_p2), %s422_s16, 3 }
   0x6   : > { %167 = sbr.rel (%p164_p2) target bundleno = 192 (0xc0), region = 36  ;;  %p190_p3 = scmp.lt.s32.totalorder (!%p164_p2), %s427_s25, 15 }
   0xb   : > { %v492_v0 = vld [vmem:[%s638_s1 + $0x38] sm:$0xff]  ;;  %v491_v1 = vld [vmem:[%s638_s1 + $0x30] sm:$0xff]  ;;  %v490_v2 = vld [vmem:[%s638_s1 + $0x28] sm:$0xff]  ;;  %s643_s25 = smov (!%p190_p3, %s427_s25), 15 }
   0xc   : > { %297 = vmatpush.bf16.msra.mxu0 %v492_v0  ;;  %516 = vmatpush.bf16.msra.mxu1 %v492_v0  ;;  %v489_v3 = vld [vmem:[%s638_s1 + $0x20] sm:$0xff]  ;;  %v488_v4 = vld [vmem:[%s638_s1 + $0x18] sm:$0xff]  ;;  %v487_v5 = vld [vmem:[%s638_s1 + $0x10] sm:$0xff]  ;;  %s428_s6 = sshll.u32 %s643_s25, 2 }
   0xd   : > { %517 = vmatpush.bf16.msra.mxu2 %v492_v0  ;;  %518 = vmatpush.bf16.msra.mxu3 %v492_v0  ;;  %v486_v6 = vld [vmem:[%s638_s1 + $0x8] sm:$0xff]  ;;  %v485_v7 = vld [vmem:[%s638_s1] sm:$0xff]  ;;  %s193_s11 = scalar_lea.vmem %s637_s0, %s428_s6  ;;  %s199_s19 = scalar_lea.vmem %s641_s4, %s428_s6 }
   0xe   : > { %v481_v8 = vld [vmem:[%s193_s11] sm:$0xff]  ;;  %v482_v9 = vld [vmem:[%s193_s11 + $0x8] sm:$0xff]  ;;  %v483_v10 = vld [vmem:[%s193_s11 + $0x10] sm:$0xff] }
   0xf   : > { %v484_v11 = vld [vmem:[%s193_s11 + $0x18] sm:$0xff]  ;;  %v548_v14 = vld [vmem:[%s639_s2] ss:$0 sm:$0xff] }
  0x10   : > { %298 = vmatpush.bf16.msra.mxu0 %v491_v1  ;;  %519 = vmatpush.bf16.msra.mxu1 %v491_v1  ;;  %v549_v16 = vld [vmem:[%s640_s3] ss:$0 sm:$0xff] }
  0x11   : > { %520 = vmatpush.bf16.msra.mxu2 %v491_v1  ;;  %521 = vmatpush.bf16.msra.mxu3 %v491_v1 }
  0x14   : > { %299 = vmatpush.bf16.msra.mxu0 %v490_v2  ;;  %522 = vmatpush.bf16.msra.mxu1 %v490_v2 }
  0x15   : > { %523 = vmatpush.bf16.msra.mxu2 %v490_v2  ;;  %524 = vmatpush.bf16.msra.mxu3 %v490_v2 }
  0x18   : > { %300 = vmatpush.bf16.msra.mxu0 %v489_v3  ;;  %525 = vmatpush.bf16.msra.mxu1 %v489_v3 }
  0x19   : > { %526 = vmatpush.bf16.msra.mxu2 %v489_v3  ;;  %527 = vmatpush.bf16.msra.mxu3 %v489_v3 }
  0x1c   : > { %301 = vmatpush.bf16.msra.mxu0 %v488_v4  ;;  %528 = vmatpush.bf16.msra.mxu1 %v488_v4 }
  0x1d   : > { %529 = vmatpush.bf16.msra.mxu2 %v488_v4  ;;  %530 = vmatpush.bf16.msra.mxu3 %v488_v4 }
  0x20   : > { %302 = vmatpush.bf16.msra.mxu0 %v487_v5  ;;  %531 = vmatpush.bf16.msra.mxu1 %v487_v5 }
  0x21   : > { %532 = vmatpush.bf16.msra.mxu2 %v487_v5  ;;  %533 = vmatpush.bf16.msra.mxu3 %v487_v5 }
  0x24   : > { %303 = vmatpush.bf16.msra.mxu0 %v486_v6  ;;  %534 = vmatpush.bf16.msra.mxu1 %v486_v6 }
  0x25   : > { %535 = vmatpush.bf16.msra.mxu2 %v486_v6  ;;  %536 = vmatpush.bf16.msra.mxu3 %v486_v6 }
  0x28   : > { %304 = vmatpush.bf16.msra.mxu0 %v485_v7  ;;  %537 = vmatpush.bf16.msra.mxu1 %v485_v7 }
  0x29   : > { %538 = vmatpush.bf16.msra.mxu2 %v485_v7  ;;  %539 = vmatpush.bf16.msra.mxu3 %v485_v7 }
  0x2b   : > { %305 = vmatmul.bf16.vlgmr.msra.gmra.mxu0 %v481_v8  ;;  %310 = vmatmul.bf16.vlgmr.msra.gmra.mxu1 %v482_v9 }
  0x2c   : > { %315 = vmatmul.bf16.vlgmr.msra.gmra.mxu2 %v483_v10  ;;  %320 = vmatmul.bf16.vlgmr.msra.gmra.mxu3 %v484_v11 }
  0xa8   : > { %v306_v12 = vpop.f32.mrf.mxu0  ;;  %v311_v13 = vpop.f32.mrf.mxu1 }
  0xa9   : > { %v330_v15 = vmul.f32 %v548_v14, %v306_v12  ;;  %v332_v17 = vmul.f32 %v548_v14, %v311_v13 }
  0xab   : > { %v342_v24 = vadd.f32 %v549_v16, %v330_v15  ;;  %v344_v25 = vadd.f32 %v549_v16, %v332_v17 }
  0xaf   : > { %v316_v18 = vpop.f32.mrf.mxu2  ;;  %v321_v19 = vpop.f32.mrf.mxu3 }
  0xb0   : > { %v308_v20 = vpop.f32.mrf.mxu0  ;;  %v313_v21 = vpop.f32.mrf.mxu1  ;;  %v334_v30 = vmul.f32 %v548_v14, %v316_v18  ;;  %v336_v31 = vmul.f32 %v548_v14, %v321_v19 }
  0xb1   : > { %v331_v22 = vmul.f32 %v548_v14, %v308_v20  ;;  %v333_v23 = vmul.f32 %v548_v14, %v313_v21 }
  0xb2   : > { %v346_v36 = vadd.f32 %v549_v16, %v334_v30  ;;  %v348_v37 = vadd.f32 %v549_v16, %v336_v31 }
  0xb3   : > { %v343_v26 = vadd.f32 %v549_v16, %v331_v22  ;;  %v345_v27 = vadd.f32 %v549_v16, %v333_v23 }
  0xb5   : > { %v496_v28 = vpack.c.bf16 %v343_v26, %v342_v24  ;;  %v501_v29 = vpack.c.bf16 %v345_v27, %v344_v25 }
  0xb7   : > { %497 = vst [vmem:[%s199_s19] sm:$0xff] %v496_v28   ;;  %v318_v32 = vpop.f32.mrf.mxu2  ;;  %v323_v33 = vpop.f32.mrf.mxu3 }
  0xb8   : > { %513 = vst [vmem:[%s199_s19 + $0x8] sm:$0xff] %v501_v29   ;;  %v335_v34 = vmul.f32 %v548_v14, %v318_v32  ;;  %v337_v35 = vmul.f32 %v548_v14, %v323_v33 }
  0xba   : > { %v347_v38 = vadd.f32 %v549_v16, %v335_v34  ;;  %v349_v39 = vadd.f32 %v549_v16, %v337_v35 }
  0xbc   : > { %v506_v40 = vpack.c.bf16 %v347_v38, %v346_v36  ;;  %v511_v41 = vpack.c.bf16 %v349_v39, %v348_v37 }
  0xbe   : > { %514 = vst [vmem:[%s199_s19 + $0x10] sm:$0xff] %v506_v40  }
  0xbf   : > { %515 = vst [vmem:[%s199_s19 + $0x18] sm:$0xff] %v511_v41  }
  0xc0 PF: > { %s14_s15 = sadd.s32 1, %s556_s15  }
  0xc1   : > { %p11_p4 = scmp.ge.s32.totalorder %s14_s15, 4  }
  0xc3   :  { %13 = sbr.rel (!%p11_p4) target bundleno = 1 (0x1), region = 66 }

// kernel: encoder_cnn_forward.13
= control target key start
LH: loop header
LB: loop body
LE: loop exit
PB: predicated region body
PF: predicated region fallthrough
CT: control target
= control target key end

     0   :  { %s702_s18 = smov 0   ;;  %s757_s0 = inlined_call_operand.vmem [shape: bf16[128,128], index: 0, kind: input, shape index: {}]   ;;  %s758_s1 = inlined_call_operand.vmem [shape: bf16[128,128], index: 1, kind: input, shape index: {}]   ;;  %s759_s2 = inlined_call_operand.vmem [shape: f32[1,128], index: 2, kind: input, shape index: {}]   ;;  %s760_s3 = inlined_call_operand.vmem [shape: f32[1,128], index: 3, kind: input, shape index: {}]   ;;  %s761_s4 = inlined_call_operand.vmem [shape: bf16[128,128], index: 4, kind: input, shape index: {}]   ;;  %s762_s5 = inlined_call_operand.vmem [shape: bf16[128,128], index: 5, kind: output, shape index: {}]  }
   0x1 LB: > { %s515_s19 = sadd.s32 4294967295, %s670_s18   ;;  %p519_p0 = scmp.ge.s32.totalorder %s670_s18, 1  ;;  %s670_s18 = sphi %s702_s18, %s15_s18  }
   0x2   : > { %p199_p1 = scmp.lt.s32.totalorder %s670_s18, 3 }
   0x4   : > { %p200_p2 = pnand %p519_p0, %p199_p1 }
   0x5   : > { %s520_s28 = sshll.u32 (!%p200_p2), %s515_s19, 3 }
   0x6   : > { %203 = sbr.rel (%p200_p2) target bundleno = 196 (0xc4), region = 40  ;;  %p233_p3 = scmp.lt.s32.totalorder (!%p200_p2), %s520_s28, 15 }
   0xb   : > { %v587_v0 = vld [vmem:[%s758_s1 + $0x38] sm:$0xff]  ;;  %v586_v1 = vld [vmem:[%s758_s1 + $0x30] sm:$0xff]  ;;  %v585_v2 = vld [vmem:[%s758_s1 + $0x28] sm:$0xff]  ;;  %s764_s28 = smov (!%p233_p3, %s520_s28), 15 }
   0xc   : > { %346 = vmatpush.bf16.msra.mxu0 %v587_v0  ;;  %630 = vmatpush.bf16.msra.mxu1 %v587_v0  ;;  %v584_v3 = vld [vmem:[%s758_s1 + $0x20] sm:$0xff]  ;;  %v583_v4 = vld [vmem:[%s758_s1 + $0x18] sm:$0xff]  ;;  %v582_v5 = vld [vmem:[%s758_s1 + $0x10] sm:$0xff]  ;;  %s731_s10 = sshll.u32 %s764_s28, 2 }
   0xd   : > { %631 = vmatpush.bf16.msra.mxu2 %v587_v0  ;;  %632 = vmatpush.bf16.msra.mxu3 %v587_v0  ;;  %v581_v6 = vld [vmem:[%s758_s1 + $0x8] sm:$0xff]  ;;  %v580_v7 = vld [vmem:[%s758_s1] sm:$0xff]  ;;  %s236_s15 = scalar_lea.vmem %s757_s0, %s731_s10  ;;  %s242_s21 = scalar_lea.vmem %s761_s4, %s731_s10 }
   0xe   : > { %v576_v8 = vld [vmem:[%s236_s15] sm:$0xff]  ;;  %v577_v9 = vld [vmem:[%s236_s15 + $0x8] sm:$0xff]  ;;  %v578_v10 = vld [vmem:[%s236_s15 + $0x10] sm:$0xff]  ;;  %s248_s26 = scalar_lea.vmem %s762_s5, %s731_s10 }
   0xf   : > { %v579_v11 = vld [vmem:[%s236_s15 + $0x18] sm:$0xff]  ;;  %v662_v12 = vld [vmem:[%s759_s2] ss:$0 sm:$0xff]  ;;  %v624_v19 = vld [vmem:[%s242_s21 + $0x8] sm:$0xff]  }
  0x10   : > { %347 = vmatpush.bf16.msra.mxu0 %v586_v1  ;;  %633 = vmatpush.bf16.msra.mxu1 %v586_v1  ;;  %v663_v16 = vld [vmem:[%s760_s3] ss:$0 sm:$0xff]  ;;  %v594_v23 = vunpack.c.l.bf16 %v624_v19  ;;  %v595_v31 = vunpack.c.h.bf16 %v624_v19  ;;  %v625_v36 = vld [vmem:[%s242_s21 + $0x10] sm:$0xff]   ;;  %v626_v37 = vld [vmem:[%s242_s21 + $0x18] sm:$0xff]  }
  0x11   : > { %634 = vmatpush.bf16.msra.mxu2 %v586_v1  ;;  %635 = vmatpush.bf16.msra.mxu3 %v586_v1  ;;  %v589_v18 = vld [vmem:[%s242_s21] sm:$0xff]   ;;  %v598_v43 = vunpack.c.l.bf16 %v625_v36  ;;  %v602_v45 = vunpack.c.l.bf16 %v626_v37  ;;  %v599_v53 = vunpack.c.h.bf16 %v625_v36  ;;  %v603_v55 = vunpack.c.h.bf16 %v626_v37 }
  0x12   : > { %v590_v21 = vunpack.c.l.bf16 %v589_v18  ;;  %v591_v29 = vunpack.c.h.bf16 %v589_v18 }
  0x14   : > { %348 = vmatpush.bf16.msra.mxu0 %v585_v2  ;;  %636 = vmatpush.bf16.msra.mxu1 %v585_v2 }
  0x15   : > { %637 = vmatpush.bf16.msra.mxu2 %v585_v2  ;;  %638 = vmatpush.bf16.msra.mxu3 %v585_v2 }
  0x18   : > { %349 = vmatpush.bf16.msra.mxu0 %v584_v3  ;;  %639 = vmatpush.bf16.msra.mxu1 %v584_v3 }
  0x19   : > { %640 = vmatpush.bf16.msra.mxu2 %v584_v3  ;;  %641 = vmatpush.bf16.msra.mxu3 %v584_v3 }
  0x1c   : > { %350 = vmatpush.bf16.msra.mxu0 %v583_v4  ;;  %642 = vmatpush.bf16.msra.mxu1 %v583_v4 }
  0x1d   : > { %643 = vmatpush.bf16.msra.mxu2 %v583_v4  ;;  %644 = vmatpush.bf16.msra.mxu3 %v583_v4 }
  0x20   : > { %351 = vmatpush.bf16.msra.mxu0 %v582_v5  ;;  %645 = vmatpush.bf16.msra.mxu1 %v582_v5 }
  0x21   : > { %646 = vmatpush.bf16.msra.mxu2 %v582_v5  ;;  %647 = vmatpush.bf16.msra.mxu3 %v582_v5 }
  0x24   : > { %352 = vmatpush.bf16.msra.mxu0 %v581_v6  ;;  %648 = vmatpush.bf16.msra.mxu1 %v581_v6 }
  0x25   : > { %649 = vmatpush.bf16.msra.mxu2 %v581_v6  ;;  %650 = vmatpush.bf16.msra.mxu3 %v581_v6 }
  0x28   : > { %353 = vmatpush.bf16.msra.mxu0 %v580_v7  ;;  %651 = vmatpush.bf16.msra.mxu1 %v580_v7 }
  0x29   : > { %652 = vmatpush.bf16.msra.mxu2 %v580_v7  ;;  %653 = vmatpush.bf16.msra.mxu3 %v580_v7 }
  0x2b   : > { %354 = vmatmul.bf16.vlgmr.msra.gmra.mxu0 %v576_v8  ;;  %359 = vmatmul.bf16.vlgmr.msra.gmra.mxu1 %v577_v9 }
  0x2c   : > { %364 = vmatmul.bf16.vlgmr.msra.gmra.mxu2 %v578_v10  ;;  %369 = vmatmul.bf16.vlgmr.msra.gmra.mxu3 %v579_v11 }
  0xa8   : > { %v355_v13 = vpop.f32.mrf.mxu0  ;;  %v360_v14 = vpop.f32.mrf.mxu1 }
  0xa9   : > { %v379_v15 = vmul.f32 %v662_v12, %v355_v13  ;;  %v381_v17 = vmul.f32 %v662_v12, %v360_v14 }
  0xab   : > { %v391_v20 = vadd.f32 %v663_v16, %v379_v15  ;;  %v393_v22 = vadd.f32 %v663_v16, %v381_v17 }
  0xad   : > { %v415_v34 = vadd.f32 %v590_v21, %v391_v20  ;;  %v417_v35 = vadd.f32 %v594_v23, %v393_v22 }
  0xaf   : > { %v365_v24 = vpop.f32.mrf.mxu2  ;;  %v370_v25 = vpop.f32.mrf.mxu3  ;;  %v423_v46 = vmax.f32 %v415_v34, 0.0  ;;  %v425_v47 = vmax.f32 %v417_v35, 0.0 }
  0xb0   : > { %v357_v26 = vpop.f32.mrf.mxu0  ;;  %v362_v27 = vpop.f32.mrf.mxu1  ;;  %v383_v32 = vmul.f32 %v662_v12, %v365_v24  ;;  %v385_v33 = vmul.f32 %v662_v12, %v370_v25 }
  0xb1   : > { %v380_v28 = vmul.f32 %v662_v12, %v357_v26  ;;  %v382_v30 = vmul.f32 %v662_v12, %v362_v27 }
  0xb2   : > { %v395_v42 = vadd.f32 %v663_v16, %v383_v32  ;;  %v397_v44 = vadd.f32 %v663_v16, %v385_v33 }
  0xb3   : > { %v392_v38 = vadd.f32 %v663_v16, %v380_v28  ;;  %v394_v39 = vadd.f32 %v663_v16, %v382_v30 }
  0xb4   : > { %v419_v58 = vadd.f32 %v598_v43, %v395_v42  ;;  %v421_v59 = vadd.f32 %v602_v45, %v397_v44 }
  0xb5   : > { %v416_v40 = vadd.f32 %v591_v29, %v392_v38  ;;  %v418_v41 = vadd.f32 %v595_v31, %v394_v39 }
  0xb6   : > { %v427_v0 = vmax.f32 %v419_v58, 0.0  ;;  %v429_v1 = vmax.f32 %v421_v59, 0.0 }
  0xb7   : > { %v424_v48 = vmax.f32 %v416_v40, 0.0  ;;  %v426_v49 = vmax.f32 %v418_v41, 0.0  ;;  %v367_v50 = vpop.f32.mrf.mxu2  ;;  %v372_v51 = vpop.f32.mrf.mxu3 }
  0xb8   : > { %v384_v52 = vmul.f32 %v662_v12, %v367_v50  ;;  %v386_v54 = vmul.f32 %v662_v12, %v372_v51 }
  0xb9   : > { %v607_v56 = vpack.c.bf16 %v424_v48, %v423_v46  ;;  %v612_v57 = vpack.c.bf16 %v426_v49, %v425_v47 }
  0xba   : > { %v396_v60 = vadd.f32 %v663_v16, %v384_v52  ;;  %v398_v61 = vadd.f32 %v663_v16, %v386_v54 }
  0xbb   : > { %608 = vst [vmem:[%s248_s26] sm:$0xff] %v607_v56  }
  0xbc   : > { %627 = vst [vmem:[%s248_s26 + $0x8] sm:$0xff] %v612_v57   ;;  %v420_v62 = vadd.f32 %v599_v53, %v396_v60  ;;  %v422_v63 = vadd.f32 %v603_v55, %v398_v61 }
  0xbe   : > { %v428_v2 = vmax.f32 %v420_v62, 0.0  ;;  %v430_v3 = vmax.f32 %v422_v63, 0.0 }
  0xc0   : > { %v617_v4 = vpack.c.bf16 %v428_v2, %v427_v0  ;;  %v622_v5 = vpack.c.bf16 %v430_v3, %v429_v1 }
  0xc2   : > { %628 = vst [vmem:[%s248_s26 + $0x10] sm:$0xff] %v617_v4  }
  0xc3   : > { %629 = vst [vmem:[%s248_s26 + $0x18] sm:$0xff] %v622_v5  }
  0xc4 PF: > { %s15_s18 = sadd.s32 1, %s670_s18  }
  0xc5   : > { %p12_p4 = scmp.ge.s32.totalorder %s15_s18, 4  }
  0xc7   :  { %14 = sbr.rel (!%p12_p4) target bundleno = 1 (0x1), region = 73 }

// kernel: encoder_cnn_forward.17
= control target key start
LH: loop header
LB: loop body
LE: loop exit
PB: predicated region body
PF: predicated region fallthrough
CT: control target
= control target key end

     0   :  { %vm300_vm0 = vcmask 1041409   ;;  %vm302_vm1 = vcmask 1042434   ;;  %vm304_vm2 = vcmask 1043459   ;;  %vm306_vm3 = vcmask 1044484   ;;  %s933_s1 = inlined_call_operand.vmem [shape: bf16[128,128], index: 1, kind: input, shape index: {}]   ;;  %s934_s0 = inlined_call_operand.vmem [shape: bf16[8,64,128], index: 0, kind: input, shape index: {}]   ;;  %s935_s2 = inlined_call_operand.vmem [shape: f32[1,128], index: 2, kind: input, shape index: {}]   ;;  %s936_s3 = inlined_call_operand.vmem [shape: f32[8,128], index: 3, kind: output, shape index: {}]  }
   0x1   :  { %v432_v0 = vld [vmem:[%s933_s1 + $0x38] sm:$0xff]  ;;  %v431_v1 = vld [vmem:[%s933_s1 + $0x30] sm:$0xff]  ;;  %v622_v2 = vld [vmem:[%s934_s0] sm:$0xff]   ;;  %vm308_vm4 = vcmask 1045509   ;;  %vm310_vm5 = vcmask 1046534   ;;  %vm312_vm6 = vcmask 1047559  }
   0x2   :  { %364 = vmatpush.bf16.msra.mxu0 %v432_v0  ;;  %v435_v3 = vunpack.c.l.bf16 %v622_v2  ;;  %v436_v4 = vunpack.c.h.bf16 %v622_v2  ;;  %v629_v5 = vld [vmem:[%s934_s0 + $0x8] sm:$0xff]   ;;  %v634_v6 = vld [vmem:[%s934_s0 + $0x10] sm:$0xff]   ;;  %v639_v7 = vld [vmem:[%s934_s0 + $0x18] sm:$0xff]  }
   0x3   :  { %v430_v8 = vld [vmem:[%s933_s1 + $0x28] sm:$0xff]  ;;  %v439_v9 = vunpack.c.l.bf16 %v629_v5  ;;  %v651_v13 = vld [vmem:[%s934_s0 + $0x20] sm:$0xff]   ;;  %v661_v15 = vld [vmem:[%s934_s0 + $0x30] sm:$0xff]  }
   0x4   :  { %v656_v14 = vld [vmem:[%s934_s0 + $0x28] sm:$0xff]   ;;  %v451_v18 = vunpack.c.l.bf16 %v651_v13  ;;  %v452_v19 = vunpack.c.h.bf16 %v651_v13  ;;  %v670_v20 = vld [vmem:[%s934_s0 + $0x38] sm:$0xff]   ;;  %v675_v21 = vld [vmem:[%s934_s0 + $0x40] sm:$0xff]  }
   0x5   :  { %v680_v22 = vld [vmem:[%s934_s0 + $0x48] sm:$0xff]   ;;  %v455_v23 = vunpack.c.l.bf16 %v656_v14  ;;  %v689_v27 = vld [vmem:[%s934_s0 + $0x50] sm:$0xff]   ;;  %v694_v28 = vld [vmem:[%s934_s0 + $0x58] sm:$0xff]   ;;  %v467_v32 = vunpack.c.l.bf16 %v675_v21  ;;  %v468_v33 = vunpack.c.h.bf16 %v675_v21 }
   0x6   :  { %365 = vmatpush.bf16.msra.mxu0 %v431_v1  ;;  %v699_v29 = vld [vmem:[%s934_s0 + $0x60] sm:$0xff]   ;;  %v708_v34 = vld [vmem:[%s934_s0 + $0x68] sm:$0xff]   ;;  %v713_v35 = vld [vmem:[%s934_s0 + $0x70] sm:$0xff]   ;;  %v471_v36 = vunpack.c.l.bf16 %v680_v22 }
   0x7   :  { %v722_v40 = vld [vmem:[%s934_s0 + $0x78] sm:$0xff]   ;;  %v727_v41 = vld [vmem:[%s934_s0 + $0x80] sm:$0xff]   ;;  %v483_v44 = vunpack.c.l.bf16 %v699_v29  ;;  %v484_v45 = vunpack.c.h.bf16 %v699_v29  ;;  %v736_v46 = vld [vmem:[%s934_s0 + $0x88] sm:$0xff]   ;;  %v487_v49 = vunpack.c.l.bf16 %v708_v34 }
   0x8   :  { %v741_v47 = vld [vmem:[%s934_s0 + $0x90] sm:$0xff]   ;;  %v429_v48 = vld [vmem:[%s933_s1 + $0x20] sm:$0xff]  ;;  %v753_v53 = vld [vmem:[%s934_s0 + $0x98] sm:$0xff]   ;;  %v499_v57 = vunpack.c.l.bf16 %v727_v41  ;;  %v500_v58 = vunpack.c.h.bf16 %v727_v41  ;;  %v503_v61 = vunpack.c.l.bf16 %v736_v46 }
   0x9   :  { %v580_v54 = vld [vmem:[%s934_s0 + $0xa0] sm:$0xff]   ;;  %v765_v59 = vld [vmem:[%s934_s0 + $0xa8] sm:$0xff]   ;;  %v770_v60 = vld [vmem:[%s934_s0 + $0xb0] sm:$0xff]  }
   0xa   :  { %366 = vmatpush.bf16.msra.mxu0 %v430_v8  ;;  %v779_v1 = vld [vmem:[%s934_s0 + $0xb8] sm:$0xff]   ;;  %v584_v8 = vld [vmem:[%s934_s0 + $0xc0] sm:$0xff]   ;;  %v515_v43 = vunpack.c.l.bf16 %v580_v54  ;;  %v516_v31 = vunpack.c.h.bf16 %v580_v54  ;;  %v585_v17 = vld [vmem:[%s934_s0 + $0xc8] sm:$0xff]   ;;  %v519_v41 = vunpack.c.l.bf16 %v765_v59  ;;  %v520_v56 = vunpack.c.h.bf16 %v765_v59 }
   0xb   :  { %v792_v55 = vld [vmem:[%s934_s0 + $0xd0] sm:$0xff]   ;;  %v428_v42 = vld [vmem:[%s933_s1 + $0x18] sm:$0xff]  ;;  %v523_v54 = vunpack.c.l.bf16 %v770_v60  ;;  %v531_v39 = vunpack.c.l.bf16 %v584_v8  ;;  %v532_v26 = vunpack.c.h.bf16 %v584_v8  ;;  %v589_v59 = vld [vmem:[%s934_s0 + $0xe8] sm:$0xff]   ;;  %v535_v12 = vunpack.c.l.bf16 %v585_v17 }
   0xc   :  { %v804_v16 = vld [vmem:[%s934_s0 + $0xd8] sm:$0xff]   ;;  %v817_v30 = vld [vmem:[%s934_s0 + $0xf0] sm:$0xff]   ;;  %v536_v63 = vunpack.c.h.bf16 %v585_v17  ;;  %v539_v51 = vunpack.c.l.bf16 %v792_v55  ;;  %v540_v38 = vunpack.c.h.bf16 %v792_v55  ;;  %v551_v62 = vunpack.c.l.bf16 %v589_v59 }
   0xd   :  { %v824_v52 = vld [vmem:[%s934_s0 + $0xf8] sm:$0xff]   ;;  %v543_v8 = vunpack.c.l.bf16 %v804_v16  ;;  %v427_v17 = vld [vmem:[%s933_s1 + $0x10] sm:$0xff]  ;;  %v552_v50 = vunpack.c.h.bf16 %v589_v59  ;;  %v555_v55 = vunpack.c.l.bf16 %v817_v30  ;;  %v556_v37 = vunpack.c.h.bf16 %v817_v30 }
   0xe   :  { %367 = vmatpush.bf16.msra.mxu0 %v429_v48  ;;  %v588_v48 = vld [vmem:[%s934_s0 + $0xe0] sm:$0xff]   ;;  %v559_v24 = vunpack.c.l.bf16 %v824_v52  ;;  %v173_v59 = vadd.f32 %v468_v33, %v467_v32  ;;  %v186_v30 = vadd.f32 %v484_v45, %v483_v44  ;;  %v199_v10 = vadd.f32 %v500_v58, %v499_v57 }
   0xf   :  { %v547_v25 = vunpack.c.l.bf16 %v588_v48  ;;  %v548_v11 = vunpack.c.h.bf16 %v588_v48  ;;  %v147_v48 = vadd.f32 %v436_v4, %v435_v3  ;;  %v212_v0 = vadd.f32 %v516_v31, %v515_v43 }
  0x10   :  { %v225_v4 = vadd.f32 %v532_v26, %v531_v39  ;;  %v187_v21 = vadd.f32 %v487_v49, %v186_v30  ;;  %v200_v29 = vadd.f32 %v503_v61, %v199_v10  ;;  %v939_v33 = vunpack.c.h.bf16 %v680_v22 }
  0x11   :  { %v148_v2 = vadd.f32 %v439_v9, %v147_v48  ;;  %v238_v13 = vadd.f32 %v548_v11, %v547_v25  ;;  %v213_v31 = vadd.f32 %v519_v41, %v212_v0  ;;  %v937_v9 = vunpack.c.h.bf16 %v629_v5 }
  0x12   :  { %368 = vmatpush.bf16.msra.mxu0 %v428_v42  ;;  %v160_v42 = vadd.f32 %v452_v19, %v451_v18  ;;  %v426_v18 = vld [vmem:[%s933_s1 + $0x8] sm:$0xff]  ;;  %v174_v19 = vadd.f32 %v471_v36, %v173_v59  ;;  %v226_v11 = vadd.f32 %v535_v12, %v225_v4  ;;  %v940_v43 = vunpack.c.h.bf16 %v708_v34  ;;  %v425_v12 = vld [vmem:[%s933_s1] sm:$0xff] }
  0x13   :  { %v149_v32 = vadd.f32 %v937_v9, %v148_v2  ;;  %v239_v25 = vadd.f32 %v551_v62, %v238_v13  ;;  %v941_v36 = vunpack.c.h.bf16 %v736_v46  ;;  %v214_v49 = vadd.f32 %v520_v56, %v213_v31 }
  0x14   :  { %v161_v3 = vadd.f32 %v455_v23, %v160_v42  ;;  %v938_v23 = vunpack.c.h.bf16 %v656_v14  ;;  %v175_v39 = vadd.f32 %v939_v33, %v174_v19  ;;  %v188_v44 = vadd.f32 %v940_v43, %v187_v21 }
  0x15   :  { %v201_v45 = vadd.f32 %v941_v36, %v200_v29  ;;  %v942_v10 = vunpack.c.l.bf16 %v634_v6  ;;  %v943_v5 = vunpack.c.l.bf16 %v661_v15  ;;  %v227_v14 = vadd.f32 %v536_v63, %v226_v11 }
  0x16   :  { %369 = vmatpush.bf16.msra.mxu0 %v427_v17  ;;  %v162_v26 = vadd.f32 %v938_v23, %v161_v3  ;;  %v240_v61 = vadd.f32 %v552_v50, %v239_v25  ;;  %v944_v22 = vunpack.c.l.bf16 %v689_v27  ;;  %v945_v46 = vunpack.c.l.bf16 %v713_v35 }
  0x17   :  { %v150_v57 = vadd.f32 %v942_v10, %v149_v32  ;;  %v946_v56 = vunpack.c.l.bf16 %v741_v47  ;;  %v215_v41 = vadd.f32 %v523_v54, %v214_v49  ;;  %v947_v17 = vunpack.c.h.bf16 %v634_v6 }
  0x18   :  { %v163_v58 = vadd.f32 %v943_v5, %v162_v26  ;;  %v176_v34 = vadd.f32 %v944_v22, %v175_v39  ;;  %v189_v62 = vadd.f32 %v945_v46, %v188_v44  ;;  %v948_v50 = vunpack.c.h.bf16 %v661_v15 }
  0x19   :  { %v202_v0 = vadd.f32 %v946_v56, %v201_v45  ;;  %v151_v48 = vadd.f32 %v947_v17, %v150_v57  ;;  %v228_v42 = vadd.f32 %v539_v51, %v227_v14  ;;  %v241_v59 = vadd.f32 %v555_v55, %v240_v61 }
  0x1a   :  { %370 = vmatpush.bf16.msra.mxu0 %v426_v18  ;;  %v164_v63 = vadd.f32 %v948_v50, %v163_v58  ;;  %v949_v30 = vunpack.c.h.bf16 %v689_v27  ;;  %v950_v3 = vunpack.c.h.bf16 %v713_v35  ;;  %v951_v13 = vunpack.c.h.bf16 %v741_v47 }
  0x1b   :  { %v952_v19 = vunpack.c.h.bf16 %v770_v60  ;;  %v953_v6 = vunpack.c.l.bf16 %v639_v7  ;;  %v954_v15 = vunpack.c.l.bf16 %v670_v20  ;;  %v229_v51 = vadd.f32 %v540_v38, %v228_v42 }
  0x1c   :  { %v177_v2 = vadd.f32 %v949_v30, %v176_v34  ;;  %v190_v4 = vadd.f32 %v950_v3, %v189_v62  ;;  %v203_v18 = vadd.f32 %v951_v13, %v202_v0  ;;  %v242_v55 = vadd.f32 %v556_v37, %v241_v59 }
  0x1d   :  { %v216_v54 = vadd.f32 %v952_v19, %v215_v41  ;;  %v152_v21 = vadd.f32 %v953_v6, %v151_v48  ;;  %v165_v29 = vadd.f32 %v954_v15, %v164_v63  ;;  %v955_v27 = vunpack.c.l.bf16 %v694_v28 }
  0x1e   :  { %371 = vmatpush.bf16.msra.mxu0 %v425_v12  ;;  %v956_v35 = vunpack.c.l.bf16 %v722_v40  ;;  %v957_v47 = vunpack.c.l.bf16 %v753_v53  ;;  %v958_v60 = vunpack.c.l.bf16 %v779_v1  ;;  %v959_v26 = vunpack.c.h.bf16 %v639_v7 }
  0x1f   :  { %v178_v31 = vadd.f32 %v955_v27, %v177_v2  ;;  %v960_v25 = vunpack.c.h.bf16 %v670_v20  ;;  %v230_v37 = vadd.f32 %v543_v8, %v229_v51  ;;  %v243_v33 = vadd.f32 %v559_v24, %v242_v55 }
  0x20   :  { %v191_v9 = vadd.f32 %v956_v35, %v190_v4  ;;  %v204_v32 = vadd.f32 %v957_v47, %v203_v18  ;;  %v217_v23 = vadd.f32 %v958_v60, %v216_v54  ;;  %v153_v11 = vadd.f32 %v959_v26, %v152_v21 }
  0x21   :  { %v166_v38 = vadd.f32 %v960_v25, %v165_v29  ;;  %v961_v39 = vunpack.c.h.bf16 %v694_v28  ;;  %v962_v44 = vunpack.c.h.bf16 %v722_v40  ;;  %v963_v45 = vunpack.c.h.bf16 %v753_v53 }
  0x22   :  { %v964_v10 = vunpack.c.h.bf16 %v779_v1  ;;  %v154_v57 = vrot.slane %v153_v11, 4  ;;  %v965_v20 = vunpack.c.h.bf16 %v804_v16  ;;  %v966_v8 = vunpack.c.h.bf16 %v824_v52 }
  0x23   :  { %v179_v43 = vadd.f32 %v961_v39, %v178_v31  ;;  %v192_v36 = vadd.f32 %v962_v44, %v191_v9  ;;  %v205_v49 = vadd.f32 %v963_v45, %v204_v32  ;;  %v167_v5 = vrot.slane %v166_v38, 4 }
  0x24   :  { %v218_v7 = vadd.f32 %v964_v10, %v217_v23  ;;  %v231_v58 = vadd.f32 %v965_v20, %v230_v37  ;;  %v244_v24 = vadd.f32 %v966_v8, %v243_v33  ;;  %v155_v40 = vadd.f32 %v154_v57, %v153_v11 }
  0x25   :  { %v180_v14 = vrot.slane %v179_v43, 4  ;;  %v193_v28 = vrot.slane %v192_v36, 4  ;;  %v206_v61 = vrot.slane %v205_v49, 4  ;;  %v168_v22 = vadd.f32 %v167_v5, %v166_v38 }
  0x26   :  { %v219_v12 = vrot.slane %v218_v7, 4  ;;  %v232_v34 = vrot.slane %v231_v58, 4  ;;  %v245_v53 = vrot.slane %v244_v24, 4  ;;  %v156_v0 = vrot.slane %v155_v40, 2 }
  0x27   :  { %v181_v46 = vadd.f32 %v180_v14, %v179_v43  ;;  %v194_v62 = vadd.f32 %v193_v28, %v192_v36  ;;  %v207_v1 = vadd.f32 %v206_v61, %v205_v49  ;;  %v169_v41 = vrot.slane %v168_v22, 2 }
  0x28   :  { %v220_v56 = vadd.f32 %v219_v12, %v218_v7  ;;  %v233_v17 = vadd.f32 %v232_v34, %v231_v58  ;;  %v246_v16 = vadd.f32 %v245_v53, %v244_v24  ;;  %v157_v42 = vadd.f32 %v156_v0, %v155_v40 }
  0x29   :  { %v182_v48 = vrot.slane %v181_v46, 2  ;;  %v195_v50 = vrot.slane %v194_v62, 2  ;;  %v208_v52 = vrot.slane %v207_v1, 2  ;;  %v170_v59 = vadd.f32 %v169_v41, %v168_v22 }
  0x2a   :  { %v221_v63 = vrot.slane %v220_v56, 2  ;;  %v234_v30 = vrot.slane %v233_v17, 2  ;;  %v247_v2 = vrot.slane %v246_v16, 2  ;;  %v158_v19 = vrot.slane %v157_v42, 1 }
  0x2b   :  { %v183_v3 = vadd.f32 %v182_v48, %v181_v46  ;;  %v196_v4 = vadd.f32 %v195_v50, %v194_v62  ;;  %v209_v13 = vadd.f32 %v208_v52, %v207_v1  ;;  %v171_v54 = vrot.slane %v170_v59, 1 }
  0x2c   :  { %v222_v18 = vadd.f32 %v221_v63, %v220_v56  ;;  %v235_v6 = vadd.f32 %v234_v30, %v233_v17  ;;  %v248_v21 = vadd.f32 %v247_v2, %v246_v16  ;;  %v159_v27 = vadd.f32 %v158_v19, %v157_v42  ;;  %v592_v17 = vld [vmem:[%s935_s2] ss:$0 sm:$0xff] }
  0x2d   :  { %v184_v15 = vrot.slane %v183_v3, 1  ;;  %v197_v29 = vrot.slane %v196_v4, 1  ;;  %v210_v51 = vrot.slane %v209_v13, 1  ;;  %v172_v31 = vadd.f32 %v171_v54, %v170_v59 }
  0x2e   :  { %v223_v55 = vrot.slane %v222_v18, 1  ;;  %v236_v35 = vrot.slane %v235_v6, 1  ;;  %v249_v9 = vrot.slane %v248_v21, 1  ;;  %v251_v25 = vmul.f32 0.015625, %v159_v27 }
  0x2f   :  { %v185_v47 = vadd.f32 %v184_v15, %v183_v3  ;;  %v198_v32 = vadd.f32 %v197_v29, %v196_v4  ;;  %v211_v60 = vadd.f32 %v210_v51, %v209_v13  ;;  %v252_v38 = vmul.f32 0.015625, %v172_v31 }
  0x30   :  { %v224_v23 = vadd.f32 %v223_v55, %v222_v18  ;;  %v237_v26 = vadd.f32 %v236_v35, %v235_v6  ;;  %v250_v11 = vadd.f32 %v249_v9, %v248_v21  ;;  %v260_v45 = vpack.c.bf16 %v251_v25, %v251_v25 }
  0x31   :  { %v253_v37 = vmul.f32 0.015625, %v185_v47  ;;  %v254_v33 = vmul.f32 0.015625, %v198_v32  ;;  %v255_v39 = vmul.f32 0.015625, %v211_v60  ;;  %v261_v49 = vpack.c.bf16 %v252_v38, %v252_v38 }
  0x32   :  { %v256_v43 = vmul.f32 0.015625, %v224_v23  ;;  %v257_v44 = vmul.f32 0.015625, %v237_v26  ;;  %v258_v36 = vmul.f32 0.015625, %v250_v11  ;;  %v292_v58 = vunpack.c.l.b16 %v260_v45 }
  0x33   :  { %v262_v10 = vpack.c.bf16 %v253_v37, %v253_v37  ;;  %v263_v7 = vpack.c.bf16 %v254_v33, %v254_v33  ;;  %v264_v57 = vpack.c.bf16 %v255_v39, %v255_v39  ;;  %v293_v8 = vunpack.c.l.b16 %v261_v49 }
  0x34   :  { %v265_v5 = vpack.c.bf16 %v256_v43, %v256_v43  ;;  %v266_v20 = vpack.c.bf16 %v257_v44, %v257_v44  ;;  %v267_v24 = vpack.c.bf16 %v258_v36, %v258_v36 }
  0x35   :  { %v294_v14 = vunpack.c.l.b16 %v262_v10  ;;  %v295_v28 = vunpack.c.l.b16 %v263_v7  ;;  %v296_v61 = vunpack.c.l.b16 %v264_v57  ;;  %v301_v40 = vsel %vm300_vm0, %v293_v8, %v292_v58 }
  0x36   :  { %v297_v12 = vunpack.c.l.b16 %v265_v5  ;;  %v298_v22 = vunpack.c.l.b16 %v266_v20  ;;  %v299_v53 = vunpack.c.l.b16 %v267_v24 }
  0x37   :  { %v303_v34 = vsel %vm302_vm1, %v294_v14, %v301_v40 }
  0x38   :  { %v305_v46 = vsel %vm304_vm2, %v295_v28, %v303_v34 }
  0x39   :  { %v307_v62 = vsel %vm306_vm3, %v296_v61, %v305_v46 }
  0x3a   :  { %v309_v1 = vsel %vm308_vm4, %v297_v12, %v307_v62 }
  0x3b   :  { %v311_v56 = vsel %vm310_vm5, %v298_v22, %v309_v1 }
  0x3c   :  { %v313_v0 = vsel %vm312_vm6, %v299_v53, %v311_v56 }
  0x3d   :  { %v314_v41 = vpack.c.b16 %v313_v0, %v313_v0 }
  0x3f   :  { %372 = vmatmul.bf16.vlgmr.msra.gmra.mxu0 %v314_v41 }
  0xbc   :  { %v373_v16 = vpop.f32.mrf.mxu0 }
  0xbd   :  { %v387_v48 = vadd.f32 %v592_v17, %v373_v16 }
  0xbf   :  { %388 = vst [vmem:[%s936_s3] sm:$0xff] %v387_v48 }
  0xc4   :  { %v375_v50 = vpop.f32.mrf.mxu0 }

</bundles_post_ra>
